<compile_context>
chip_gen: v7x
topology: tpu7x:2x2x1
jax: 0.10.0
libtpu: 0.0.40
codegen_flags: <defaults>
</compile_context>

<pallas_src>
import functools

import jax
import jax.numpy as jnp
from jax.experimental import pallas as pl
from jax.experimental.pallas import tpu as pltpu

BN_EPS = 1e-5
_VMEM_LIMIT = 64 * 1024 * 1024


def _round_up(x, m):
    return (x + m - 1) // m * m


def _pick_tile_m(m):
    # Multiple of 128 (lane/sublane friendly for bf16 + f32), capped at 512 so
    # 2x double-buffered input/output tiles + weights stay well under the
    # smallest VMEM budget (v7x: 64 MiB per TensorCore).
    return min(512, _round_up(max(m, 8), 128))


# ---------------------------------------------------------------------------
# Kernels
# ---------------------------------------------------------------------------
def _matmul_stats_kernel(p_ref, w_ref, o_ref, stats_ref):
    """Pass 1: conv-as-matmul (bf16 in, f32 acc) + per-tile sum / sumsq."""
    acc = jnp.dot(p_ref[...], w_ref[...], preferred_element_type=jnp.float32)
    o_ref[...] = acc
    s = jnp.sum(acc, axis=0, keepdims=True)          # (1, Cout)
    sq = jnp.sum(acc * acc, axis=0, keepdims=True)   # (1, Cout)
    stats_ref[...] = jnp.concatenate([s, sq], axis=0)[None]   # (1, 2, Cout)


def _bn_relu_kernel(x_ref, scale_ref, shift_ref, o_ref):
    """Pass 2: y = max(x*scale + shift, 0) with precomputed per-channel affine."""
    y = x_ref[...] * scale_ref[...] + shift_ref[...]
    o_ref[...] = jnp.maximum(y, 0.0).astype(o_ref.dtype)


def _bn_relu_matmul_stats_kernel(x_ref, scale_ref, shift_ref, w_ref,
                                 o_ref, stats_ref, *, tile_m, m_true):
    """Layer-3 BN+ReLU apply fused with layer-4 1x1 conv matmul + its stats."""
    y = jnp.maximum(x_ref[...] * scale_ref[...] + shift_ref[...], 0.0)
    # Mask rows beyond the true M (zero-padded tail) so they contribute
    # nothing to the layer-4 output / statistics.
    row = pl.program_id(0) * tile_m + jax.lax.broadcasted_iota(
        jnp.int32, y.shape, 0)
    y = jnp.where(row < m_true, y, 0.0)
    acc = jnp.dot(y.astype(w_ref.dtype), w_ref[...],
                  preferred_element_type=jnp.float32)
    o_ref[...] = acc
    s = jnp.sum(acc, axis=0, keepdims=True)
    sq = jnp.sum(acc * acc, axis=0, keepdims=True)
    stats_ref[...] = jnp.concatenate([s, sq], axis=0)[None]


# ---------------------------------------------------------------------------
# pallas_call wrappers
# ---------------------------------------------------------------------------
def _conv_stats_pass(patches_bf16, w2d_bf16, tile_m, num_tiles):
    m_pad, k = patches_bf16.shape
    cout = w2d_bf16.shape[1]
    return pl.pallas_call(
        _matmul_stats_kernel,
        out_shape=(jax.ShapeDtypeStruct((m_pad, cout), jnp.float32),
                   jax.ShapeDtypeStruct((num_tiles, 2, cout), jnp.float32)),
        grid=(num_tiles,),
        in_specs=[pl.BlockSpec((tile_m, k), lambda i: (i, 0)),
                  pl.BlockSpec((k, cout), lambda i: (0, 0))],
        out_specs=(pl.BlockSpec((tile_m, cout), lambda i: (i, 0)),
                   pl.BlockSpec((1, 2, cout), lambda i: (i, 0, 0))),
        compiler_params=pltpu.CompilerParams(
            dimension_semantics=("parallel",),
            vmem_limit_bytes=_VMEM_LIMIT),
        cost_estimate=pl.CostEstimate(
            flops=2 * m_pad * k * cout,
            transcendentals=0,
            bytes_accessed=(m_pad * k * 2 + k * cout * 2
                            + m_pad * cout * 4 + num_tiles * 2 * cout * 4)),
    )(patches_bf16, w2d_bf16)


def _bn_relu_pass(conv_out, scale, shift, tile_m, num_tiles, out_dtype):
    m_pad, cout = conv_out.shape
    return pl.pallas_call(
        _bn_relu_kernel,
        out_shape=jax.ShapeDtypeStruct((m_pad, cout), out_dtype),
        grid=(num_tiles,),
        in_specs=[pl.BlockSpec((tile_m, cout), lambda i: (i, 0)),
                  pl.BlockSpec((1, cout), lambda i: (0, 0)),
                  pl.BlockSpec((1, cout), lambda i: (0, 0))],
        out_specs=pl.BlockSpec((tile_m, cout), lambda i: (i, 0)),
        compiler_params=pltpu.CompilerParams(
            dimension_semantics=("parallel",),
            vmem_limit_bytes=_VMEM_LIMIT),
    )(conv_out, scale, shift)


def _bn_relu_matmul_stats_pass(conv_out, scale, shift, w2_bf16,
                               tile_m, num_tiles, m_true):
    m_pad, cin = conv_out.shape
    cout = w2_bf16.shape[1]
    kernel = functools.partial(_bn_relu_matmul_stats_kernel,
                               tile_m=tile_m, m_true=m_true)
    return pl.pallas_call(
        kernel,
        out_shape=(jax.ShapeDtypeStruct((m_pad, cout), jnp.float32),
                   jax.ShapeDtypeStruct((num_tiles, 2, cout), jnp.float32)),
        grid=(num_tiles,),
        in_specs=[pl.BlockSpec((tile_m, cin), lambda i: (i, 0)),
                  pl.BlockSpec((1, cin), lambda i: (0, 0)),
                  pl.BlockSpec((1, cin), lambda i: (0, 0)),
                  pl.BlockSpec((cin, cout), lambda i: (0, 0))],
        out_specs=(pl.BlockSpec((tile_m, cout), lambda i: (i, 0)),
                   pl.BlockSpec((1, 2, cout), lambda i: (i, 0, 0))),
        compiler_params=pltpu.CompilerParams(
            dimension_semantics=("parallel",),
            vmem_limit_bytes=_VMEM_LIMIT),
        cost_estimate=pl.CostEstimate(
            flops=2 * m_pad * cin * cout,
            transcendentals=0,
            bytes_accessed=(m_pad * cin * 4 + cin * cout * 2
                            + m_pad * cout * 4 + num_tiles * 2 * cout * 4)),
    )(conv_out, scale, shift, w2_bf16)


# ---------------------------------------------------------------------------
# JAX glue: im2col, BN finalize, layer drivers
# ---------------------------------------------------------------------------
def _im2col_nhwc(x, k, stride, pad):
    """x: (N,H,W,C) -> patches (N*Ho*Wo, k*k*C), channel ordering (kh, kw, C)."""
    N, H, W, C = x.shape
    Ho = (H + 2 * pad - k) // stride + 1
    Wo = (W + 2 * pad - k) // stride + 1
    if k == 1 and stride == 1 and pad == 0:
        return x.reshape(N * H * W, C), (N, H, W)
    xp = jnp.pad(x, ((0, 0), (pad, pad), (pad, pad), (0, 0)))
    cols = []
    for i in range(k):
        for j in range(k):
            cols.append(xp[:, i:i + (Ho - 1) * stride + 1:stride,
                           j:j + (Wo - 1) * stride + 1:stride, :])
    patches = jnp.concatenate(cols, axis=-1)          # (N, Ho, Wo, k*k*C)
    return patches.reshape(N * Ho * Wo, k * k * C), (N, Ho, Wo)


def _bn_scale_shift(stats, m_true, gamma, beta):
    """Global (cross-tile) BN batch statistics -> per-channel scale/shift."""
    s = jnp.sum(stats[:, 0, :], axis=0)
    sq = jnp.sum(stats[:, 1, :], axis=0)
    mean = s / m_true
    var = jnp.maximum(sq / m_true - mean * mean, 0.0)   # biased var (BN fwd)
    scale = gamma * jax.lax.rsqrt(var + BN_EPS)
    shift = beta - mean * scale
    return (scale.reshape(1, -1).astype(jnp.float32),
            shift.reshape(1, -1).astype(jnp.float32))


def _prep_patches(x_nhwc, k, stride, pad):
    patches, (n, ho, wo) = _im2col_nhwc(
        x_nhwc.astype(jnp.bfloat16), k, stride, pad)
    m, kk = patches.shape
    tile_m = _pick_tile_m(m)
    num_tiles = -(-m // tile_m)
    m_pad = tile_m * num_tiles
    if m_pad != m:
        patches = jnp.pad(patches, ((0, m_pad - m), (0, 0)))
    return patches, (n, ho, wo), m, kk, tile_m, num_tiles


def conv_module(x_nhwc, w, gamma, beta, *, k, stride, pad):
    """One ConvModule: conv(bias=False) + BatchNorm(batch stats) + ReLU."""
    cout = w.shape[0]
    patches, (n, ho, wo), m, kk, tile_m, num_tiles = _prep_patches(
        x_nhwc, k, stride, pad)
    # torch conv weight (Cout,Cin,kh,kw) -> (kh,kw,Cin,Cout) -> (K,Cout), bf16.
    w2d = jnp.transpose(w, (2, 3, 1, 0)).reshape(kk, cout).astype(jnp.bfloat16)

    conv_out, stats = _conv_stats_pass(patches, w2d, tile_m, num_tiles)
    scale, shift = _bn_scale_shift(stats, m, gamma, beta)
    y = _bn_relu_pass(conv_out, scale, shift, tile_m, num_tiles, jnp.float32)
    return y[:m].reshape(n, ho, wo, cout)


def conv_module_fused_1x1(x_nhwc, p3, p4):
    """Layer 3 (3x3 s2) ConvModule with layer 4 (1x1) conv fused into its apply."""
    c3 = p3["w"].shape[0]
    c4 = p4["w"].shape[0]
    patches, (n, ho, wo), m, kk, tile_m, num_tiles = _prep_patches(
        x_nhwc, p3["k"], p3["stride"], p3["pad"])
    w3 = jnp.transpose(p3["w"], (2, 3, 1, 0)).reshape(kk, c3).astype(jnp.bfloat16)
    w4 = jnp.transpose(p4["w"], (2, 3, 1, 0)).reshape(c3, c4).astype(jnp.bfloat16)

    conv3, stats3 = _conv_stats_pass(patches, w3, tile_m, num_tiles)
    scale3, shift3 = _bn_scale_shift(stats3, m, p3["gamma"], p3["beta"])
    conv4, stats4 = _bn_relu_matmul_stats_pass(
        conv3, scale3, shift3, w4, tile_m, num_tiles, m)
    scale4, shift4 = _bn_scale_shift(stats4, m, p4["gamma"], p4["beta"])
    y = _bn_relu_pass(conv4, scale4, shift4, tile_m, num_tiles, jnp.float32)
    return y[:m].reshape(n, ho, wo, c4)


def init_stem_params(key, in_chans=3, inner_dim=32, embed_dim=64):
    """Deterministic synthetic parameters matching StemLayer's shapes."""
    cfgs = [
        (in_chans, inner_dim, 7, 4, 3),
        (inner_dim, inner_dim, 3, 2, 1),
        (inner_dim, inner_dim, 3, 2, 1),
        (inner_dim, embed_dim, 1, 1, 0),
    ]
    params = []
    for (cin, cout, k, s, p) in cfgs:
        key, k1, k2, k3 = jax.random.split(key, 4)
        fan_in = cin * k * k
        w = jax.random.normal(k1, (cout, cin, k, k), jnp.float32) * (2.0 / fan_in) ** 0.5
        gamma = 1.0 + 0.1 * jax.random.normal(k2, (cout,), jnp.float32)
        beta = 0.1 * jax.random.normal(k3, (cout,), jnp.float32)
        params.append(dict(w=w, gamma=gamma, beta=beta, k=k, stride=s, pad=p))
    return params


def stem_layer(x_nchw, params):
    """StemLayer.forward: NCHW in -> NCHW out (H, W reduced by 16x)."""
    x = jnp.transpose(x_nchw, (0, 2, 3, 1))  # NCHW -> NHWC
    p1, p2, p3, p4 = params
    x = conv_module(x, p1["w"], p1["gamma"], p1["beta"],
                    k=p1["k"], stride=p1["stride"], pad=p1["pad"])
    x = conv_module(x, p2["w"], p2["gamma"], p2["beta"],
                    k=p2["k"], stride=p2["stride"], pad=p2["pad"])
    x = conv_module_fused_1x1(x, p3, p4)
    return jnp.transpose(x, (0, 3, 1, 2))    # NHWC -> NCHW


if __name__ == "__main__":
    key = jax.random.PRNGKey(0)
    k_x, k_p = jax.random.split(key)

    # Small shapes consistent with the module: N=2, in_chans=3, 32x32 input,
    # inner_dim=32, embed_dim=64 (module defaults 128/768, scaled down).
    x = jax.random.normal(k_x, (2, 3, 32, 32), jnp.float32)
    params = init_stem_params(k_p, in_chans=3, inner_dim=32, embed_dim=64)

    out = jax.jit(lambda inp: stem_layer(inp, params))(x)
    out = jax.block_until_ready(out)

    assert out.shape == (2, 64, 2, 2), out.shape
    assert bool(jnp.all(jnp.isfinite(out)))
    print("KERNEL_OK")
</pallas_src>

<mosaic_0001>
module attributes {stable_mosaic.version = 11 : i64} {
  func.func @_matmul_stats_kernel(%arg0: i32, %arg1: memref<128x147xbf16, #tpu.memory_space<vmem>>, %arg2: memref<147x32xbf16, #tpu.memory_space<vmem>>, %arg3: memref<128x32xf32, #tpu.memory_space<vmem>>, %arg4: memref<1x2x32xf32, #tpu.memory_space<vmem>>) attributes {dimension_semantics = [#tpu.dimension_semantics<parallel>], iteration_bounds = array<i64: 1>, scalar_prefetch = 0 : i64, scratch_operands = 0 : i64, tpu.core_type = #tpu.core_type<tc>, window_params = [{transform_indices = @transform_0, window_bounds = array<i64: 128, 147>}, {pipeline_mode = #tpu.pipeline_mode<synchronous>, transform_indices = @transform_1, window_bounds = array<i64: 147, 32>}, {transform_indices = @transform_2, window_bounds = array<i64: 128, 32>}, {transform_indices = @transform_3, window_bounds = array<i64: 1, 2, 32>}]} {
    %c0 = arith.constant 0 : index
    %c0_0 = arith.constant 0 : index
    %0 = vector.load %arg1[%c0, %c0_0] : memref<128x147xbf16, #tpu.memory_space<vmem>>, vector<128x147xbf16>
    %c0_1 = arith.constant 0 : index
    %c0_2 = arith.constant 0 : index
    %1 = vector.load %arg2[%c0_1, %c0_2] : memref<147x32xbf16, #tpu.memory_space<vmem>>, vector<147x32xbf16>
    %cst = arith.constant dense<0.000000e+00> : vector<128x32xf32>
    %2 = tpu.matmul %0, %1, %cst {dimension_numbers = #tpu.dot_dimension_numbers<[1], [0], [0], [1], [0, 0, 1, 1], [], []>} : vector<128x147xbf16>, vector<147x32xbf16>, vector<128x32xf32> -> vector<128x32xf32>
    %c0_3 = arith.constant 0 : index
    %c0_4 = arith.constant 0 : index
    %3 = vector.load %arg3[%c0_3, %c0_4] : memref<128x32xf32, #tpu.memory_space<vmem>>, vector<128x32xf32>
    tpu.vector_store %arg3[%c0_3, %c0_4], %2 {strides = array<i32>} : memref<128x32xf32, #tpu.memory_space<vmem>>, vector<128x32xf32>,
    %cst_5 = arith.constant dense<0.000000e+00> : vector<32xf32>
    %4 = vector.multi_reduction <add>, %2, %cst_5 [0] : vector<128x32xf32> to vector<32xf32>
    %5 = vector.shape_cast %4 : vector<32xf32> to vector<1x32xf32>
    %6 = arith.mulf %2, %2 : vector<128x32xf32>
    %cst_6 = arith.constant dense<0.000000e+00> : vector<32xf32>
    %7 = vector.multi_reduction <add>, %6, %cst_6 [0] : vector<128x32xf32> to vector<32xf32>
    %8 = vector.shape_cast %7 : vector<32xf32> to vector<1x32xf32>
    %9 = tpu.concatenate %5, %8 in 0 : vector<1x32xf32>, vector<1x32xf32> -> vector<2x32xf32>
    %10 = vector.shape_cast %9 : vector<2x32xf32> to vector<1x2x32xf32>
    %c0_7 = arith.constant 0 : index
    %c0_8 = arith.constant 0 : index
    %c0_9 = arith.constant 0 : index
    %11 = vector.load %arg4[%c0_7, %c0_8, %c0_9] : memref<1x2x32xf32, #tpu.memory_space<vmem>>, vector<1x2x32xf32>
    tpu.vector_store %arg4[%c0_7, %c0_8, %c0_9], %10 {strides = array<i32>} : memref<1x2x32xf32, #tpu.memory_space<vmem>>, vector<1x2x32xf32>,
    return
  }
  func.func @transform_0(%arg0: i32) -> (i32, i32) {
    %c0_i32 = arith.constant 0 : i32
    %c0_i32_0 = arith.constant 0 : i32
    return %arg0, %c0_i32 : i32, i32
  }
  func.func @transform_1(%arg0: i32) -> (i32, i32) {
    %c0_i32 = arith.constant 0 : i32
    %c0_i32_0 = arith.constant 0 : i32
    %c0_i32_1 = arith.constant 0 : i32
    return %c0_i32, %c0_i32_0 : i32, i32
  }
  func.func @transform_2(%arg0: i32) -> (i32, i32) {
    %c0_i32 = arith.constant 0 : i32
    %c0_i32_0 = arith.constant 0 : i32
    return %arg0, %c0_i32 : i32, i32
  }
  func.func @transform_3(%arg0: i32) -> (i32, i32, i32) {
    %c0_i32 = arith.constant 0 : i32
    %c0_i32_0 = arith.constant 0 : i32
    %c0_i32_1 = arith.constant 0 : i32
    return %arg0, %c0_i32, %c0_i32_0 : i32, i32, i32
  }
}

module attributes {stable_mosaic.version = 11 : i64} {
  func.func @_bn_relu_kernel(%arg0: i32, %arg1: memref<128x32xf32, #tpu.memory_space<vmem>>, %arg2: memref<1x32xf32, #tpu.memory_space<vmem>>, %arg3: memref<1x32xf32, #tpu.memory_space<vmem>>, %arg4: memref<128x32xf32, #tpu.memory_space<vmem>>) attributes {dimension_semantics = [#tpu.dimension_semantics<parallel>], iteration_bounds = array<i64: 1>, scalar_prefetch = 0 : i64, scratch_operands = 0 : i64, tpu.core_type = #tpu.core_type<tc>, window_params = [{transform_indices = @transform_0, window_bounds = array<i64: 128, 32>}, {pipeline_mode = #tpu.pipeline_mode<synchronous>, transform_indices = @transform_1, window_bounds = array<i64: 1, 32>}, {pipeline_mode = #tpu.pipeline_mode<synchronous>, transform_indices = @transform_2, window_bounds = array<i64: 1, 32>}, {transform_indices = @transform_3, window_bounds = array<i64: 128, 32>}]} {
    %c0 = arith.constant 0 : index
    %c0_0 = arith.constant 0 : index
    %0 = vector.load %arg1[%c0, %c0_0] : memref<128x32xf32, #tpu.memory_space<vmem>>, vector<128x32xf32>
    %c0_1 = arith.constant 0 : index
    %c0_2 = arith.constant 0 : index
    %1 = vector.load %arg2[%c0_1, %c0_2] : memref<1x32xf32, #tpu.memory_space<vmem>>, vector<1x32xf32>
    %2 = vector.broadcast %1 : vector<1x32xf32> to vector<128x32xf32>
    %3 = arith.mulf %0, %2 : vector<128x32xf32>
    %c0_3 = arith.constant 0 : index
    %c0_4 = arith.constant 0 : index
    %4 = vector.load %arg3[%c0_3, %c0_4] : memref<1x32xf32, #tpu.memory_space<vmem>>, vector<1x32xf32>
    %5 = vector.broadcast %4 : vector<1x32xf32> to vector<128x32xf32>
    %6 = arith.addf %3, %5 : vector<128x32xf32>
    %cst = arith.constant 0.000000e+00 : f32
    %7 = vector.broadcast %cst : f32 to vector<128x32xf32>
    %8 = arith.maximumf %6, %7 : vector<128x32xf32>
    %c0_5 = arith.constant 0 : index
    %c0_6 = arith.constant 0 : index
    %9 = vector.load %arg4[%c0_5, %c0_6] : memref<128x32xf32, #tpu.memory_space<vmem>>, vector<128x32xf32>
    tpu.vector_store %arg4[%c0_5, %c0_6], %8 {strides = array<i32>} : memref<128x32xf32, #tpu.memory_space<vmem>>, vector<128x32xf32>,
    return
  }
  func.func @transform_0(%arg0: i32) -> (i32, i32) {
    %c0_i32 = arith.constant 0 : i32
    %c0_i32_0 = arith.constant 0 : i32
    return %arg0, %c0_i32 : i32, i32
  }
  func.func @transform_1(%arg0: i32) -> (i32, i32) {
    %c0_i32 = arith.constant 0 : i32
    %c0_i32_0 = arith.constant 0 : i32
    %c0_i32_1 = arith.constant 0 : i32
    return %c0_i32, %c0_i32_0 : i32, i32
  }
  func.func @transform_2(%arg0: i32) -> (i32, i32) {
    %c0_i32 = arith.constant 0 : i32
    %c0_i32_0 = arith.constant 0 : i32
    %c0_i32_1 = arith.constant 0 : i32
    return %c0_i32, %c0_i32_0 : i32, i32
  }
  func.func @transform_3(%arg0: i32) -> (i32, i32) {
    %c0_i32 = arith.constant 0 : i32
    %c0_i32_0 = arith.constant 0 : i32
    return %arg0, %c0_i32 : i32, i32
  }
}

module attributes {stable_mosaic.version = 11 : i64} {
  func.func @_matmul_stats_kernel(%arg0: i32, %arg1: memref<128x288xbf16, #tpu.memory_space<vmem>>, %arg2: memref<288x32xbf16, #tpu.memory_space<vmem>>, %arg3: memref<128x32xf32, #tpu.memory_space<vmem>>, %arg4: memref<1x2x32xf32, #tpu.memory_space<vmem>>) attributes {dimension_semantics = [#tpu.dimension_semantics<parallel>], iteration_bounds = array<i64: 1>, scalar_prefetch = 0 : i64, scratch_operands = 0 : i64, tpu.core_type = #tpu.core_type<tc>, window_params = [{transform_indices = @transform_0, window_bounds = array<i64: 128, 288>}, {pipeline_mode = #tpu.pipeline_mode<synchronous>, transform_indices = @transform_1, window_bounds = array<i64: 288, 32>}, {transform_indices = @transform_2, window_bounds = array<i64: 128, 32>}, {transform_indices = @transform_3, window_bounds = array<i64: 1, 2, 32>}]} {
    %c0 = arith.constant 0 : index
    %c0_0 = arith.constant 0 : index
    %0 = vector.load %arg1[%c0, %c0_0] : memref<128x288xbf16, #tpu.memory_space<vmem>>, vector<128x288xbf16>
    %c0_1 = arith.constant 0 : index
    %c0_2 = arith.constant 0 : index
    %1 = vector.load %arg2[%c0_1, %c0_2] : memref<288x32xbf16, #tpu.memory_space<vmem>>, vector<288x32xbf16>
    %cst = arith.constant dense<0.000000e+00> : vector<128x32xf32>
    %2 = tpu.matmul %0, %1, %cst {dimension_numbers = #tpu.dot_dimension_numbers<[1], [0], [0], [1], [0, 0, 1, 1], [], []>} : vector<128x288xbf16>, vector<288x32xbf16>, vector<128x32xf32> -> vector<128x32xf32>
    %c0_3 = arith.constant 0 : index
    %c0_4 = arith.constant 0 : index
    %3 = vector.load %arg3[%c0_3, %c0_4] : memref<128x32xf32, #tpu.memory_space<vmem>>, vector<128x32xf32>
    tpu.vector_store %arg3[%c0_3, %c0_4], %2 {strides = array<i32>} : memref<128x32xf32, #tpu.memory_space<vmem>>, vector<128x32xf32>,
    %cst_5 = arith.constant dense<0.000000e+00> : vector<32xf32>
    %4 = vector.multi_reduction <add>, %2, %cst_5 [0] : vector<128x32xf32> to vector<32xf32>
    %5 = vector.shape_cast %4 : vector<32xf32> to vector<1x32xf32>
    %6 = arith.mulf %2, %2 : vector<128x32xf32>
    %cst_6 = arith.constant dense<0.000000e+00> : vector<32xf32>
    %7 = vector.multi_reduction <add>, %6, %cst_6 [0] : vector<128x32xf32> to vector<32xf32>
    %8 = vector.shape_cast %7 : vector<32xf32> to vector<1x32xf32>
    %9 = tpu.concatenate %5, %8 in 0 : vector<1x32xf32>, vector<1x32xf32> -> vector<2x32xf32>
    %10 = vector.shape_cast %9 : vector<2x32xf32> to vector<1x2x32xf32>
    %c0_7 = arith.constant 0 : index
    %c0_8 = arith.constant 0 : index
    %c0_9 = arith.constant 0 : index
    %11 = vector.load %arg4[%c0_7, %c0_8, %c0_9] : memref<1x2x32xf32, #tpu.memory_space<vmem>>, vector<1x2x32xf32>
    tpu.vector_store %arg4[%c0_7, %c0_8, %c0_9], %10 {strides = array<i32>} : memref<1x2x32xf32, #tpu.memory_space<vmem>>, vector<1x2x32xf32>,
    return
  }
  func.func @transform_0(%arg0: i32) -> (i32, i32) {
    %c0_i32 = arith.constant 0 : i32
    %c0_i32_0 = arith.constant 0 : i32
    return %arg0, %c0_i32 : i32, i32
  }
  func.func @transform_1(%arg0: i32) -> (i32, i32) {
    %c0_i32 = arith.constant 0 : i32
    %c0_i32_0 = arith.constant 0 : i32
    %c0_i32_1 = arith.constant 0 : i32
    return %c0_i32, %c0_i32_0 : i32, i32
  }
  func.func @transform_2(%arg0: i32) -> (i32, i32) {
    %c0_i32 = arith.constant 0 : i32
    %c0_i32_0 = arith.constant 0 : i32
    return %arg0, %c0_i32 : i32, i32
  }
  func.func @transform_3(%arg0: i32) -> (i32, i32, i32) {
    %c0_i32 = arith.constant 0 : i32
    %c0_i32_0 = arith.constant 0 : i32
    %c0_i32_1 = arith.constant 0 : i32
    return %arg0, %c0_i32, %c0_i32_0 : i32, i32, i32
  }
}

module attributes {stable_mosaic.version = 11 : i64} {
  func.func @_bn_relu_kernel(%arg0: i32, %arg1: memref<128x64xf32, #tpu.memory_space<vmem>>, %arg2: memref<1x64xf32, #tpu.memory_space<vmem>>, %arg3: memref<1x64xf32, #tpu.memory_space<vmem>>, %arg4: memref<128x64xf32, #tpu.memory_space<vmem>>) attributes {dimension_semantics = [#tpu.dimension_semantics<parallel>], iteration_bounds = array<i64: 1>, scalar_prefetch = 0 : i64, scratch_operands = 0 : i64, tpu.core_type = #tpu.core_type<tc>, window_params = [{transform_indices = @transform_0, window_bounds = array<i64: 128, 64>}, {pipeline_mode = #tpu.pipeline_mode<synchronous>, transform_indices = @transform_1, window_bounds = array<i64: 1, 64>}, {pipeline_mode = #tpu.pipeline_mode<synchronous>, transform_indices = @transform_2, window_bounds = array<i64: 1, 64>}, {transform_indices = @transform_3, window_bounds = array<i64: 128, 64>}]} {
    %c0 = arith.constant 0 : index
    %c0_0 = arith.constant 0 : index
    %0 = vector.load %arg1[%c0, %c0_0] : memref<128x64xf32, #tpu.memory_space<vmem>>, vector<128x64xf32>
    %c0_1 = arith.constant 0 : index
    %c0_2 = arith.constant 0 : index
    %1 = vector.load %arg2[%c0_1, %c0_2] : memref<1x64xf32, #tpu.memory_space<vmem>>, vector<1x64xf32>
    %2 = vector.broadcast %1 : vector<1x64xf32> to vector<128x64xf32>
    %3 = arith.mulf %0, %2 : vector<128x64xf32>
    %c0_3 = arith.constant 0 : index
    %c0_4 = arith.constant 0 : index
    %4 = vector.load %arg3[%c0_3, %c0_4] : memref<1x64xf32, #tpu.memory_space<vmem>>, vector<1x64xf32>
    %5 = vector.broadcast %4 : vector<1x64xf32> to vector<128x64xf32>
    %6 = arith.addf %3, %5 : vector<128x64xf32>
    %cst = arith.constant 0.000000e+00 : f32
    %7 = vector.broadcast %cst : f32 to vector<128x64xf32>
    %8 = arith.maximumf %6, %7 : vector<128x64xf32>
    %c0_5 = arith.constant 0 : index
    %c0_6 = arith.constant 0 : index
    %9 = vector.load %arg4[%c0_5, %c0_6] : memref<128x64xf32, #tpu.memory_space<vmem>>, vector<128x64xf32>
    tpu.vector_store %arg4[%c0_5, %c0_6], %8 {strides = array<i32>} : memref<128x64xf32, #tpu.memory_space<vmem>>, vector<128x64xf32>,
    return
  }
  func.func @transform_0(%arg0: i32) -> (i32, i32) {
    %c0_i32 = arith.constant 0 : i32
    %c0_i32_0 = arith.constant 0 : i32
    return %arg0, %c0_i32 : i32, i32
  }
  func.func @transform_1(%arg0: i32) -> (i32, i32) {
    %c0_i32 = arith.constant 0 : i32
    %c0_i32_0 = arith.constant 0 : i32
    %c0_i32_1 = arith.constant 0 : i32
    return %c0_i32, %c0_i32_0 : i32, i32
  }
  func.func @transform_2(%arg0: i32) -> (i32, i32) {
    %c0_i32 = arith.constant 0 : i32
    %c0_i32_0 = arith.constant 0 : i32
    %c0_i32_1 = arith.constant 0 : i32
    return %c0_i32, %c0_i32_0 : i32, i32
  }
  func.func @transform_3(%arg0: i32) -> (i32, i32) {
    %c0_i32 = arith.constant 0 : i32
    %c0_i32_0 = arith.constant 0 : i32
    return %arg0, %c0_i32 : i32, i32
  }
}

module attributes {stable_mosaic.version = 11 : i64} {
  func.func @_bn_relu_matmul_stats_kernel(%arg0: i32, %arg1: memref<128x32xf32, #tpu.memory_space<vmem>>, %arg2: memref<1x32xf32, #tpu.memory_space<vmem>>, %arg3: memref<1x32xf32, #tpu.memory_space<vmem>>, %arg4: memref<32x64xbf16, #tpu.memory_space<vmem>>, %arg5: memref<128x64xf32, #tpu.memory_space<vmem>>, %arg6: memref<1x2x64xf32, #tpu.memory_space<vmem>>) attributes {dimension_semantics = [#tpu.dimension_semantics<parallel>], iteration_bounds = array<i64: 1>, scalar_prefetch = 0 : i64, scratch_operands = 0 : i64, tpu.core_type = #tpu.core_type<tc>, window_params = [{transform_indices = @transform_0, window_bounds = array<i64: 128, 32>}, {pipeline_mode = #tpu.pipeline_mode<synchronous>, transform_indices = @transform_1, window_bounds = array<i64: 1, 32>}, {pipeline_mode = #tpu.pipeline_mode<synchronous>, transform_indices = @transform_2, window_bounds = array<i64: 1, 32>}, {pipeline_mode = #tpu.pipeline_mode<synchronous>, transform_indices = @transform_3, window_bounds = array<i64: 32, 64>}, {transform_indices = @transform_4, window_bounds = array<i64: 128, 64>}, {transform_indices = @transform_5, window_bounds = array<i64: 1, 2, 64>}]} {
    %c0 = arith.constant 0 : index
    %c0_0 = arith.constant 0 : index
    %0 = vector.load %arg1[%c0, %c0_0] : memref<128x32xf32, #tpu.memory_space<vmem>>, vector<128x32xf32>
    %c0_1 = arith.constant 0 : index
    %c0_2 = arith.constant 0 : index
    %1 = vector.load %arg2[%c0_1, %c0_2] : memref<1x32xf32, #tpu.memory_space<vmem>>, vector<1x32xf32>
    %2 = vector.broadcast %1 : vector<1x32xf32> to vector<128x32xf32>
    %3 = arith.mulf %0, %2 : vector<128x32xf32>
    %c0_3 = arith.constant 0 : index
    %c0_4 = arith.constant 0 : index
    %4 = vector.load %arg3[%c0_3, %c0_4] : memref<1x32xf32, #tpu.memory_space<vmem>>, vector<1x32xf32>
    %5 = vector.broadcast %4 : vector<1x32xf32> to vector<128x32xf32>
    %6 = arith.addf %3, %5 : vector<128x32xf32>
    %cst = arith.constant 0.000000e+00 : f32
    %7 = vector.broadcast %cst : f32 to vector<128x32xf32>
    %8 = arith.maximumf %6, %7 : vector<128x32xf32>
    %c128_i32 = arith.constant 128 : i32
    %9 = arith.muli %arg0, %c128_i32 : i32
    %10 = tpu.iota {dimensions = array<i32: 0>} : vector<128x32xi32>
    %11 = vector.broadcast %9 : i32 to vector<128x32xi32>
    %12 = arith.addi %11, %10 : vector<128x32xi32>
    %c8_i32 = arith.constant 8 : i32
    %13 = vector.broadcast %c8_i32 : i32 to vector<128x32xi32>
    %14 = arith.cmpi slt, %12, %13 : vector<128x32xi32>
    %cst_5 = arith.constant 0.000000e+00 : f32
    %15 = vector.broadcast %cst_5 : f32 to vector<128x32xf32>
    %16 = arith.select %14, %8, %15 : vector<128x32xi1>, vector<128x32xf32>
    %17 = arith.truncf %16 : vector<128x32xf32> to vector<128x32xbf16>
    %c0_6 = arith.constant 0 : index
    %c0_7 = arith.constant 0 : index
    %18 = vector.load %arg4[%c0_6, %c0_7] : memref<32x64xbf16, #tpu.memory_space<vmem>>, vector<32x64xbf16>
    %cst_8 = arith.constant dense<0.000000e+00> : vector<128x64xf32>
    %19 = tpu.matmul %17, %18, %cst_8 {dimension_numbers = #tpu.dot_dimension_numbers<[1], [0], [0], [1], [0, 0, 1, 1], [], []>} : vector<128x32xbf16>, vector<32x64xbf16>, vector<128x64xf32> -> vector<128x64xf32>
    %c0_9 = arith.constant 0 : index
    %c0_10 = arith.constant 0 : index
    %20 = vector.load %arg5[%c0_9, %c0_10] : memref<128x64xf32, #tpu.memory_space<vmem>>, vector<128x64xf32>
    tpu.vector_store %arg5[%c0_9, %c0_10], %19 {strides = array<i32>} : memref<128x64xf32, #tpu.memory_space<vmem>>, vector<128x64xf32>,
    %cst_11 = arith.constant dense<0.000000e+00> : vector<64xf32>
    %21 = vector.multi_reduction <add>, %19, %cst_11 [0] : vector<128x64xf32> to vector<64xf32>
    %22 = vector.shape_cast %21 : vector<64xf32> to vector<1x64xf32>
    %23 = arith.mulf %19, %19 : vector<128x64xf32>
    %cst_12 = arith.constant dense<0.000000e+00> : vector<64xf32>
    %24 = vector.multi_reduction <add>, %23, %cst_12 [0] : vector<128x64xf32> to vector<64xf32>
    %25 = vector.shape_cast %24 : vector<64xf32> to vector<1x64xf32>
    %26 = tpu.concatenate %22, %25 in 0 : vector<1x64xf32>, vector<1x64xf32> -> vector<2x64xf32>
    %27 = vector.shape_cast %26 : vector<2x64xf32> to vector<1x2x64xf32>
    %c0_13 = arith.constant 0 : index
    %c0_14 = arith.constant 0 : index
    %c0_15 = arith.constant 0 : index
    %28 = vector.load %arg6[%c0_13, %c0_14, %c0_15] : memref<1x2x64xf32, #tpu.memory_space<vmem>>, vector<1x2x64xf32>
    tpu.vector_store %arg6[%c0_13, %c0_14, %c0_15], %27 {strides = array<i32>} : memref<1x2x64xf32, #tpu.memory_space<vmem>>, vector<1x2x64xf32>,
    return
  }
  func.func @transform_0(%arg0: i32) -> (i32, i32) {
    %c0_i32 = arith.constant 0 : i32
    %c0_i32_0 = arith.constant 0 : i32
    return %arg0, %c0_i32 : i32, i32
  }
  func.func @transform_1(%arg0: i32) -> (i32, i32) {
    %c0_i32 = arith.constant 0 : i32
    %c0_i32_0 = arith.constant 0 : i32
    %c0_i32_1 = arith.constant 0 : i32
    return %c0_i32, %c0_i32_0 : i32, i32
  }
  func.func @transform_2(%arg0: i32) -> (i32, i32) {
    %c0_i32 = arith.constant 0 : i32
    %c0_i32_0 = arith.constant 0 : i32
    %c0_i32_1 = arith.constant 0 : i32
    return %c0_i32, %c0_i32_0 : i32, i32
  }
  func.func @transform_3(%arg0: i32) -> (i32, i32) {
    %c0_i32 = arith.constant 0 : i32
    %c0_i32_0 = arith.constant 0 : i32
    %c0_i32_1 = arith.constant 0 : i32
    return %c0_i32, %c0_i32_0 : i32, i32
  }
  func.func @transform_4(%arg0: i32) -> (i32, i32) {
    %c0_i32 = arith.constant 0 : i32
    %c0_i32_0 = arith.constant 0 : i32
    return %arg0, %c0_i32 : i32, i32
  }
  func.func @transform_5(%arg0: i32) -> (i32, i32, i32) {
    %c0_i32 = arith.constant 0 : i32
    %c0_i32_0 = arith.constant 0 : i32
    %c0_i32_1 = arith.constant 0 : i32
    return %arg0, %c0_i32, %c0_i32_0 : i32, i32, i32
  }
}

</mosaic_0001>

<bundles_post_ra>
// kernel: _lambda_.8
= control target key start
LH: loop header
LB: loop body
LE: loop exit
PB: predicated region body
PF: predicated region fallthrough
CT: control target
= control target key end

     0   :  { %8 = vsyncpa [#allocation3], 0  ;;  %s388_s0 = inlined_call_operand.hbm [shape: f32[128,32], index: 0, kind: input, shape index: {}]   ;;  %s389_s1 = inlined_call_operand.hbm [shape: f32[1,32], index: 1, kind: input, shape index: {}]   ;;  %s390_s2 = inlined_call_operand.hbm [shape: f32[1,32], index: 2, kind: input, shape index: {}]   ;;  %s391_s3 = inlined_call_operand.hbm [shape: f32[128,32], index: 3, kind: output, shape index: {}]  }
   0x1   :  { %9 = vsyncpa [#allocation6], 0 }
   0x2   :  { %10 = vsyncpa [#allocation4], 0  ;;  %s267_s12 = smov [#allocation5]   ;;  %s268_s14 = smov [#allocation2]  }
   0x3   :  { %s29_s13 = sshll.u32 %s267_s12, 4  ;;  %s16_s15 = sshll.u32 %s268_s14, 4  ;;  %s30_s13 = int_to_ptr.vmem [resolvable:$true] %s29_s13  ;;  %s293_s15 = int_to_ptr.vmem [resolvable:$true] %s16_s15 }
   0x4   :  { %s173_s18 = scalar_lea.hbm %s389_s1, 16 }
   0x5   :  { %p174_p0 = scmp.ne.s32.totalorder %s389_s1, %s173_s18  ;;  %p177_p1 = scmp.lt.u32.totalorder %s173_s18, %s389_s1 }
   0x7   :  { %p179_p2 = pnand %p177_p1, %p174_p0 }
   0x9   :  { %182 = shalt.err (!%p179_p2)
}
   0xa   :  { %s183_s23 = scalar_lea.vmem %s30_s13, 16  ;;  %s187_s24 = scalar_lea.vmem %s30_s13, 32 }
   0xb   :  { %p184_p3 = scmp.ne.s32.totalorder %s30_s13, %s183_s23  ;;  %p188_p4 = scmp.lt.s32.totalorder %s30_s13, %s30_s13 }
   0xc   :  { %p189_p5 = scmp.lt.s32.totalorder %s187_s24, %s183_s23 }
   0xe   :  { %p190_p6 = por %p189_p5, %p188_p4 }
  0x10   :  { %p191_p7 = pnand %p190_p6, %p184_p3 }
  0x12   :  { %194 = shalt.err (!%p191_p7)
}
  0x13   :  { %32 = dma.hbm_to_vmem [thread:$0]  %s389_s1, 16, %s30_s13, [#allocation6]  }
  0x14   :  { %s195_s29 = scalar_lea.hbm %s388_s0, 2048 }
  0x15   :  { %p196_p8 = scmp.ne.s32.totalorder %s388_s0, %s195_s29  ;;  %p199_p9 = scmp.lt.u32.totalorder %s195_s29, %s388_s0 }
  0x17   :  { %p201_p10 = pnand %p199_p9, %p196_p8 }
  0x19   :  { %204 = shalt.err (!%p201_p10)
}
  0x1a   :  { %s205_s7 = scalar_lea.vmem %s293_s15, 2048  ;;  %p210_p12 = scmp.lt.s32.totalorder %s293_s15, %s293_s15 }
  0x1b   :  { %p206_p11 = scmp.ne.s32.totalorder %s293_s15, %s205_s7  ;;  %p211_p13 = scmp.lt.s32.totalorder %s205_s7, %s205_s7 }
  0x1d   :  { %p212_p0 = por %p211_p13, %p210_p12 }
  0x1f   :  { %p213_p1 = pnand %p212_p0, %p206_p11 }
  0x21   :  { %216 = shalt.err (!%p213_p1)
}
  0x22   :  { %s269_s1 = smov 128   ;;  %s270_s8 = smov 8  }
  0x23   :  { %22 = dma.hbm_to_vmem [thread:$0]  %s388_s0, 2048, %s293_s15, [#allocation3], %s269_s1, %s269_s1, %s270_s8  }
  0x24   :  { %s271_s11 = smov [#allocation7]   ;;  %s217_s16 = scalar_lea.hbm %s390_s2, 16 }
  0x25   :  { %s39_s12 = sshll.u32 %s271_s11, 4  ;;  %p218_p2 = scmp.ne.s32.totalorder %s390_s2, %s217_s16  ;;  %s40_s12 = int_to_ptr.vmem [resolvable:$true] %s39_s12 }
  0x26   :  { %p221_p3 = scmp.lt.u32.totalorder %s217_s16, %s390_s2 }
  0x28   :  { %p223_p4 = pnand %p221_p3, %p218_p2 }
  0x2a   :  { %226 = shalt.err (!%p223_p4)
}
  0x2b   :  { %s227_s21 = scalar_lea.vmem %s40_s12, 16  ;;  %s231_s0 = scalar_lea.vmem %s40_s12, 32 }
  0x2c   :  { %p228_p5 = scmp.ne.s32.totalorder %s40_s12, %s227_s21  ;;  %p232_p6 = scmp.lt.s32.totalorder %s40_s12, %s40_s12 }
  0x2d   :  { %p233_p7 = scmp.lt.s32.totalorder %s231_s0, %s227_s21 }
  0x2f   :  { %p234_p8 = por %p233_p7, %p232_p6 }
  0x31   :  { %p235_p9 = pnand %p234_p8, %p228_p5 }
  0x33   :  { %238 = shalt.err (!%p235_p9)
}
  0x34   :  { %42 = dma.hbm_to_vmem [thread:$0]  %s390_s2, 16, %s40_s12, [#allocation6]  }
  0x35   :  { %261 = dma.done.wait [#allocation3], 2048  }
  0x36   :  { %262 = vsyncadd [#allocation3], 4294965248 }
  0x37   :  { %263 = dma.done.wait [#allocation6], 32  }
  0x38   :  { %264 = vsyncadd [#allocation6], 4294967264  ;;  %v52_v0 = vld [vmem:[#allocation2] sm:$0xff]  ;;  %v53_v4 = vld [vmem:[#allocation2 + $0x8] sm:$0xff]  ;;  %vm130_vm0 = vcmask 261120   ;;  %s272_s2 = smov [#allocation8]  }
  0x39   :  { %v165_v1 = vld [vmem:[#allocation5] ss:$0 sm:$0xff]  ;;  %v339_v2 = vld [vmem:[#allocation7] ss:$0 sm:$0xff]  ;;  %v54_v5 = vld [vmem:[#allocation2 + $0x10] sm:$0xff]  ;;  %s152_s23 = sshll.u32 %s272_s2, 4  ;;  %s153_s23 = int_to_ptr.vmem [resolvable:$true] %s152_s23 }
  0x3a   :  { %v75_v3 = vmul.f32 %v165_v1, %v52_v0  ;;  %v55_v6 = vld [vmem:[#allocation2 + $0x18] sm:$0xff]  ;;  %v76_v7 = vmul.f32 %v165_v1, %v53_v4  ;;  %v77_v8 = vmul.f32 %v165_v1, %v54_v5  ;;  %v56_v10 = vld [vmem:[#allocation2 + $0x20] sm:$0xff]  ;;  %v57_v11 = vld [vmem:[#allocation2 + $0x28] sm:$0xff]  ;;  %s239_s24 = scalar_lea.vmem %s153_s23, 2048  ;;  %p244_p11 = scmp.lt.s32.totalorder %s153_s23, %s153_s23 }
  0x3b   :  { %v78_v9 = vmul.f32 %v165_v1, %v55_v6  ;;  %v58_v12 = vld [vmem:[#allocation2 + $0x30] sm:$0xff]  ;;  %v79_v14 = vmul.f32 %v165_v1, %v56_v10  ;;  %v80_v15 = vmul.f32 %v165_v1, %v57_v11  ;;  %v59_v17 = vld [vmem:[#allocation2 + $0x38] sm:$0xff]  ;;  %v60_v22 = vld [vmem:[#allocation2 + $0x40] sm:$0xff]  ;;  %p240_p10 = scmp.ne.s32.totalorder %s153_s23, %s239_s24  ;;  %p245_p12 = scmp.lt.s32.totalorder %s239_s24, %s239_s24 }
  0x3c   :  { %v98_v13 = vadd.f32 %v339_v2, %v75_v3  ;;  %v81_v16 = vmul.f32 %v165_v1, %v58_v12  ;;  %v99_v18 = vadd.f32 %v339_v2, %v76_v7  ;;  %v100_v19 = vadd.f32 %v339_v2, %v77_v8  ;;  %v61_v27 = vld [vmem:[#allocation2 + $0x48] sm:$0xff]  ;;  %v62_v28 = vld [vmem:[#allocation2 + $0x50] sm:$0xff]  ;;  %v63_v29 = vld [vmem:[#allocation2 + $0x58] sm:$0xff] }
  0x3d   :  { %v101_v20 = vadd.f32 %v339_v2, %v78_v9  ;;  %v82_v21 = vmul.f32 %v165_v1, %v59_v17  ;;  %v102_v24 = vadd.f32 %v339_v2, %v79_v14  ;;  %v103_v25 = vadd.f32 %v339_v2, %v80_v15  ;;  %v64_v34 = vld [vmem:[#allocation2 + $0x60] sm:$0xff]  ;;  %v65_v35 = vld [vmem:[#allocation2 + $0x68] sm:$0xff]  ;;  %v66_v36 = vld [vmem:[#allocation2 + $0x70] sm:$0xff]  ;;  %p246_p13 = por %p245_p12, %p244_p11 }
  0x3e   :  { %v114_v23 = vmax.f32 %v98_v13, 0.0  ;;  %v104_v26 = vadd.f32 %v339_v2, %v81_v16  ;;  %v115_v30 = vmax.f32 %v99_v18, 0.0  ;;  %v116_v31 = vmax.f32 %v100_v19, 0.0  ;;  %v67_v41 = vld [vmem:[#allocation2 + $0x78] sm:$0xff] }
  0x3f   :  { %v117_v32 = vmax.f32 %v101_v20, 0.0  ;;  %v105_v33 = vadd.f32 %v339_v2, %v82_v21  ;;  %v118_v37 = vmax.f32 %v102_v24, 0.0  ;;  %v119_v38 = vmax.f32 %v103_v25, 0.0  ;;  %p247_p0 = pnand %p246_p13, %p240_p10 }
  0x40   :  { %131 = vst.msk [vmem:[#allocation8] sm:$0xff] %vm130_vm0, %v114_v23  ;;  %v120_v39 = vmax.f32 %v104_v26, 0.0  ;;  %v83_v40 = vmul.f32 %v165_v1, %v60_v22  ;;  %132 = vst.msk [vmem:[#allocation8 + $0x8] sm:$0xff] %vm130_vm0, %v115_v30  ;;  %v84_v43 = vmul.f32 %v165_v1, %v61_v27  ;;  %v85_v44 = vmul.f32 %v165_v1, %v62_v28 }
  0x41   :  { %133 = vst.msk [vmem:[#allocation8 + $0x10] sm:$0xff] %vm130_vm0, %v116_v31  ;;  %134 = vst.msk [vmem:[#allocation8 + $0x18] sm:$0xff] %vm130_vm0, %v117_v32  ;;  %v121_v42 = vmax.f32 %v105_v33, 0.0  ;;  %v86_v45 = vmul.f32 %v165_v1, %v63_v29  ;;  %v87_v47 = vmul.f32 %v165_v1, %v64_v34  ;;  %v88_v48 = vmul.f32 %v165_v1, %v65_v35 }
  0x42   :  { %135 = vst.msk [vmem:[#allocation8 + $0x20] sm:$0xff] %vm130_vm0, %v118_v37  ;;  %136 = vst.msk [vmem:[#allocation8 + $0x28] sm:$0xff] %vm130_vm0, %v119_v38  ;;  %v106_v46 = vadd.f32 %v339_v2, %v83_v40  ;;  %v89_v49 = vmul.f32 %v165_v1, %v66_v36  ;;  %v107_v50 = vadd.f32 %v339_v2, %v84_v43 }
  0x43   :  { %137 = vst.msk [vmem:[#allocation8 + $0x30] sm:$0xff] %vm130_vm0, %v120_v39  ;;  %138 = vst.msk [vmem:[#allocation8 + $0x38] sm:$0xff] %vm130_vm0, %v121_v42  ;;  %v108_v51 = vadd.f32 %v339_v2, %v85_v44  ;;  %v109_v52 = vadd.f32 %v339_v2, %v86_v45  ;;  %v90_v53 = vmul.f32 %v165_v1, %v67_v41 }
  0x44   :  { %v122_v54 = vmax.f32 %v106_v46, 0.0  ;;  %v110_v55 = vadd.f32 %v339_v2, %v87_v47  ;;  %v111_v56 = vadd.f32 %v339_v2, %v88_v48  ;;  %v112_v57 = vadd.f32 %v339_v2, %v89_v49 }
  0x45   :  { %v123_v58 = vmax.f32 %v107_v50, 0.0  ;;  %v124_v59 = vmax.f32 %v108_v51, 0.0  ;;  %v125_v60 = vmax.f32 %v109_v52, 0.0  ;;  %v113_v61 = vadd.f32 %v339_v2, %v90_v53 }
  0x46   :  { %139 = vst.msk [vmem:[#allocation8 + $0x40] sm:$0xff] %vm130_vm0, %v122_v54  ;;  %v126_v62 = vmax.f32 %v110_v55, 0.0  ;;  %v127_v63 = vmax.f32 %v111_v56, 0.0  ;;  %v128_v0 = vmax.f32 %v112_v57, 0.0 }
  0x47   :  { %140 = vst.msk [vmem:[#allocation8 + $0x48] sm:$0xff] %vm130_vm0, %v123_v58  ;;  %141 = vst.msk [vmem:[#allocation8 + $0x50] sm:$0xff] %vm130_vm0, %v124_v59  ;;  %v129_v1 = vmax.f32 %v113_v61, 0.0 }
  0x48   :  { %142 = vst.msk [vmem:[#allocation8 + $0x58] sm:$0xff] %vm130_vm0, %v125_v60  ;;  %143 = vst.msk [vmem:[#allocation8 + $0x60] sm:$0xff] %vm130_vm0, %v126_v62 }
  0x49   :  { %144 = vst.msk [vmem:[#allocation8 + $0x68] sm:$0xff] %vm130_vm0, %v127_v63  ;;  %145 = vst.msk [vmem:[#allocation8 + $0x70] sm:$0xff] %vm130_vm0, %v128_v0 }
  0x4a   :  { %146 = vst.msk [vmem:[#allocation8 + $0x78] sm:$0xff] %vm130_vm0, %v129_v1 }
  0x4b   :  { %250 = shalt.err (!%p247_p0)
}
  0x4c   :  { %s251_s27 = scalar_lea.hbm %s391_s3, 2048 }
  0x4d   :  { %p252_p1 = scmp.ne.s32.totalorder %s391_s3, %s251_s27  ;;  %p255_p2 = scmp.lt.u32.totalorder %s251_s27, %s391_s3 }
  0x4f   :  { %p257_p3 = pnand %p255_p2, %p252_p1 }
  0x51   :  { %260 = shalt.err (!%p257_p3)
}
  0x52   :  { %158 = dma.vmem_to_hbm [thread:$0]  %s153_s23, 2048, %s391_s3, [#allocation4], %s269_s1, %s269_s1, %s270_s8  }
  0x53   :  { %265 = dma.done.wait [#allocation4], 2048  }
  0x54   :  { %266 = vsyncadd [#allocation4], 4294965248 }
  0x55   :  { %162 = vsyncpa [#allocation3], 1 }
  0x56   :  { %163 = vsyncpa [#allocation6], 1 }
  0x57   :  { %164 = vsyncpa [#allocation4], 1 }

// kernel: _lambda_.7
= control target key start
LH: loop header
LB: loop body
LE: loop exit
PB: predicated region body
PF: predicated region fallthrough
CT: control target
= control target key end

     0   :  { %9 = vsyncpa [#allocation3], 0  ;;  %s858_s0 = inlined_call_operand.hbm [shape: bf16[128,147], index: 0, kind: input, shape index: {}]   ;;  %s859_s1 = inlined_call_operand.hbm [shape: bf16[147,32], index: 1, kind: input, shape index: {}]   ;;  %s860_s2 = inlined_call_operand.hbm [shape: f32[128,32], index: 2, kind: output, shape index: {0}]   ;;  %s861_s3 = inlined_call_operand.hbm [shape: f32[1,2,32], index: 3, kind: output, shape index: {1}]  }
   0x1   :  { %10 = vsyncpa [#allocation6], 0 }
   0x2   :  { %11 = vsyncpa [#allocation4], 0 }
   0x3   :  { %12 = vsyncpa [#allocation9], 0  ;;  %s673_s12 = smov [#allocation2]   ;;  %s577_s16 = scalar_lea.hbm %s858_s0, 2048 }
   0x4   :  { %s18_s13 = sshll.u32 %s673_s12, 4  ;;  %p578_p0 = scmp.ne.s32.totalorder %s858_s0, %s577_s16  ;;  %s19_s13 = int_to_ptr.vmem [resolvable:$true] %s18_s13 }
   0x5   :  { %p581_p1 = scmp.lt.u32.totalorder %s577_s16, %s858_s0 }
   0x7   :  { %p583_p2 = pnand %p581_p1, %p578_p0 }
   0x9   :  { %586 = shalt.err (!%p583_p2)
}
   0xa   :  { %s587_s21 = scalar_lea.vmem %s19_s13, 2048  ;;  %p592_p4 = scmp.lt.s32.totalorder %s19_s13, %s19_s13 }
   0xb   :  { %p588_p3 = scmp.ne.s32.totalorder %s19_s13, %s587_s21  ;;  %p593_p5 = scmp.lt.s32.totalorder %s587_s21, %s587_s21 }
   0xd   :  { %p594_p6 = por %p593_p5, %p592_p4 }
   0xf   :  { %p595_p7 = pnand %p594_p6, %p588_p3 }
  0x11   :  { %598 = shalt.err (!%p595_p7)
}
  0x12   :  { %s674_s22 = smov 128   ;;  %s675_s23 = smov 8  }
  0x13   :  { %24 = dma.hbm_to_vmem [thread:$0]  %s858_s0, 2048, %s19_s13, [#allocation3], %s674_s22, %s674_s22, %s675_s23  }
  0x14   :  { %s676_s26 = smov [#allocation5]   ;;  %s599_s30 = scalar_lea.hbm %s859_s1, 1216 }
  0x15   :  { %s30_s27 = sshll.u32 %s676_s26, 4  ;;  %p600_p8 = scmp.ne.s32.totalorder %s859_s1, %s599_s30  ;;  %s31_s27 = int_to_ptr.vmem [resolvable:$true] %s30_s27 }
  0x16   :  { %p603_p9 = scmp.lt.u32.totalorder %s599_s30, %s859_s1 }
  0x18   :  { %p605_p10 = pnand %p603_p9, %p600_p8 }
  0x1a   :  { %608 = shalt.err (!%p605_p10)
}
  0x1b   :  { %s609_s8 = scalar_lea.vmem %s31_s27, 1216  ;;  %p614_p12 = scmp.lt.s32.totalorder %s31_s27, %s31_s27 }
  0x1c   :  { %p610_p11 = scmp.ne.s32.totalorder %s31_s27, %s609_s8  ;;  %p615_p13 = scmp.lt.s32.totalorder %s609_s8, %s609_s8 }
  0x1e   :  { %p616_p0 = por %p615_p13, %p614_p12 }
  0x20   :  { %p617_p1 = pnand %p616_p0, %p610_p11 }
  0x22   :  { %620 = shalt.err (!%p617_p1)
}
  0x23   :  { %s677_s0 = smov 64   ;;  %s678_s9 = smov 4  }
  0x24   :  { %36 = dma.hbm_to_vmem [thread:$0]  %s859_s1, 1216, %s31_s27, [#allocation6], %s677_s0, %s677_s0, %s678_s9  }
  0x25   :  { %665 = dma.done.wait [#allocation3], 2048  }
  0x26   :  { %666 = vsyncadd [#allocation3], 4294965248 }
  0x27   :  { %667 = dma.done.wait [#allocation6], 1216  }
  0x28   :  { %668 = vsyncadd [#allocation6], 4294966080  ;;  %v679_v0 = vmov 0   ;;  %v543_v1 = vld [vmem:[#allocation5] sm:$0xff]   ;;  %v544_v2 = vld [vmem:[#allocation5 + $0x8] sm:$0xff]   ;;  %vm208_vm0 = vcmask 154624  }
  0x29   :  { %240 = vmatprep.subr.bf16.mxu0 %v679_v0  ;;  %513 = vmatprep.subr.bf16.mxu1 %v679_v0  ;;  %v545_v3 = vld [vmem:[#allocation5 + $0x10] sm:$0xff]   ;;  %v546_v4 = vld [vmem:[#allocation5 + $0x18] sm:$0xff]   ;;  %v555_v5 = vld [vmem:[#allocation2 + $0x4] ss:$8 sps:$4 sm:$0xff]   ;;  %vm233_vm1 = vcmask 1040384   ;;  %vm234_vm2 = vcmask 1041408  }
  0x2a   :  { %241 = vmatpush1.bf16.msra.mxu0 %v543_v1  ;;  %523 = vmatpush1.bf16.msra.mxu1 %v543_v1  ;;  %v561_v6 = vld [vmem:[#allocation2 + $0x44] ss:$8 sps:$4 sm:$0xff]   ;;  %v549_v9 = vld [vmem:[#allocation5 + $0x30] sm:$0xff]   ;;  %v550_v10 = vld [vmem:[#allocation5 + $0x38] sm:$0xff]   ;;  %v680_v11 = vmov 65535   ;;  %vm337_vm3 = vcmask 261120  }
  0x2b   :  { %242 = vmatprep.subr.bf16.mxu0 %v679_v0  ;;  %514 = vmatprep.subr.bf16.mxu1 %v679_v0  ;;  %v547_v7 = vld [vmem:[#allocation5 + $0x20] sm:$0xff]   ;;  %v548_v8 = vld [vmem:[#allocation5 + $0x28] sm:$0xff]   ;;  %v235_v12 = vsel %vm233_vm1, 4294967295, %v680_v11  ;;  %v556_v19 = vld [vmem:[#allocation2 + $0x14] ss:$8 sps:$4 sm:$0xff]   ;;  %s681_s1 = smov [#allocation7]  }
  0x2c   :  { %505 = vmatprep.mubr.msk.bf16.mxu0 %vm208_vm0, %v555_v5  ;;  %509 = vmatprep.mubr.msk.bf16.mxu1 %vm208_vm0, %v561_v6  ;;  %v551_v13 = vld [vmem:[#allocation5 + $0x40] sm:$0xff]   ;;  %v552_v14 = vld [vmem:[#allocation5 + $0x48] ss:$0 sps:$4 sm:$0x33]   ;;  %v236_v15 = vsel %vm234_vm2, %v235_v12, 0  ;;  %s452_s12 = sshll.u32 %s681_s1, 4  ;;  %s784_s12 = int_to_ptr.vmem [resolvable:$true] %s452_s12 }
  0x2d   :  { %v238_v16 = vand.u32 %v552_v14, %v236_v15  ;;  %v553_v17 = vld [vmem:[#allocation2] ss:$8 sps:$4 sm:$0xff]   ;;  %v565_v20 = vld [vmem:[#allocation2 + $0x54] ss:$8 sps:$4 sm:$0xff]   ;;  %v558_v21 = vld [vmem:[#allocation2 + $0x10] ss:$8 sps:$4 sm:$0xff]   ;;  %p626_p3 = scmp.lt.s32.totalorder %s784_s12, %s784_s12 }
  0x2e   :  { %243 = vmatpush1.bf16.msra.mxu0 %v544_v2  ;;  %524 = vmatpush1.bf16.msra.mxu1 %v544_v2  ;;  %v559_v18 = vld [vmem:[#allocation2 + $0x40] ss:$8 sps:$4 sm:$0xff]   ;;  %v567_v22 = vld [vmem:[#allocation2 + $0x50] ss:$8 sps:$4 sm:$0xff]   ;;  %v562_v23 = vld [vmem:[#allocation2 + $0x24] ss:$8 sps:$4 sm:$0xff]  }
  0x2f   :  { %244 = vmatprep.subr.bf16.mxu0 %v679_v0  ;;  %515 = vmatprep.subr.bf16.mxu1 %v679_v0  ;;  %v571_v24 = vld [vmem:[#allocation2 + $0x64] ss:$8 sps:$4 sm:$0xff]   ;;  %v564_v25 = vld [vmem:[#allocation2 + $0x20] ss:$8 sps:$4 sm:$0xff]   ;;  %v568_v27 = vld [vmem:[#allocation2 + $0x34] ss:$8 sps:$4 sm:$0xff]  }
  0x30   :  { %v573_v26 = vld [vmem:[#allocation2 + $0x60] ss:$8 sps:$4 sm:$0xff]   ;;  %v574_v28 = vld [vmem:[#allocation2 + $0x74] ss:$8 sps:$4 sm:$0xff]   ;;  %v570_v29 = vld [vmem:[#allocation2 + $0x30] ss:$8 sps:$4 sm:$0xff]  }
  0x31   :  { %v576_v30 = vld [vmem:[#allocation2 + $0x70] ss:$8 sps:$4 sm:$0xff]   ;;  %s621_s13 = scalar_lea.vmem %s784_s12, 2048 }
  0x32   :  { %245 = vmatpush1.bf16.msra.mxu0 %v545_v3  ;;  %525 = vmatpush1.bf16.msra.mxu1 %v545_v3  ;;  %p622_p2 = scmp.ne.s32.totalorder %s784_s12, %s621_s13  ;;  %p627_p4 = scmp.lt.s32.totalorder %s621_s13, %s621_s13 }
  0x33   :  { %246 = vmatprep.subr.bf16.mxu0 %v679_v0  ;;  %516 = vmatprep.subr.bf16.mxu1 %v679_v0 }
  0x34   :  { %p628_p5 = por %p627_p4, %p626_p3 }
  0x36   :  { %247 = vmatpush1.bf16.msra.mxu0 %v546_v4  ;;  %526 = vmatpush1.bf16.msra.mxu1 %v546_v4  ;;  %p629_p6 = pnand %p628_p5, %p622_p2 }
  0x37   :  { %248 = vmatprep.subr.bf16.mxu0 %v679_v0  ;;  %517 = vmatprep.subr.bf16.mxu1 %v679_v0 }
  0x3a   :  { %249 = vmatpush1.bf16.msra.mxu0 %v547_v7  ;;  %527 = vmatpush1.bf16.msra.mxu1 %v547_v7 }
  0x3b   :  { %250 = vmatprep.subr.bf16.mxu0 %v679_v0  ;;  %518 = vmatprep.subr.bf16.mxu1 %v679_v0 }
  0x3e   :  { %251 = vmatpush1.bf16.msra.mxu0 %v548_v8  ;;  %528 = vmatpush1.bf16.msra.mxu1 %v548_v8 }
  0x3f   :  { %252 = vmatprep.subr.bf16.mxu0 %v679_v0  ;;  %519 = vmatprep.subr.bf16.mxu1 %v679_v0 }
  0x42   :  { %253 = vmatpush1.bf16.msra.mxu0 %v549_v9  ;;  %529 = vmatpush1.bf16.msra.mxu1 %v549_v9 }
  0x43   :  { %254 = vmatprep.subr.bf16.mxu0 %v679_v0  ;;  %520 = vmatprep.subr.bf16.mxu1 %v679_v0 }
  0x46   :  { %255 = vmatpush1.bf16.msra.mxu0 %v550_v10  ;;  %530 = vmatpush1.bf16.msra.mxu1 %v550_v10 }
  0x47   :  { %256 = vmatprep.subr.bf16.mxu0 %v679_v0  ;;  %521 = vmatprep.subr.bf16.mxu1 %v679_v0 }
  0x4a   :  { %257 = vmatpush1.bf16.msra.mxu0 %v551_v13  ;;  %531 = vmatpush1.bf16.msra.mxu1 %v551_v13 }
  0x4b   :  { %258 = vmatprep.subr.bf16.mxu0 %v679_v0  ;;  %522 = vmatprep.subr.bf16.mxu1 %v679_v0 }
  0x4e   :  { %259 = vmatpush1.bf16.msra.mxu0 %v238_v16  ;;  %532 = vmatpush1.bf16.msra.mxu1 %v238_v16 }
  0x51   :  { %273 = vmatmul.mubr.bf16.vlgmr.msra.gmra.mrb[0].mxu0 %v553_v17  ;;  %305 = vmatmul.mubr.bf16.vlgmr.msra.gmra.mrb[0].mxu1 %v559_v18 }
  0x52   :  { %506 = vmatprep.mubr.msk.bf16.mxu0 %vm208_vm0, %v556_v19  ;;  %510 = vmatprep.mubr.msk.bf16.mxu1 %vm208_vm0, %v565_v20 }
  0x59   :  { %281 = vmatmul.mubr.bf16.gmra.mrb[4].mxu0 %v558_v21  ;;  %313 = vmatmul.mubr.bf16.gmra.mrb[4].mxu1 %v567_v22 }
  0x5a   :  { %507 = vmatprep.mubr.msk.bf16.mxu0 %vm208_vm0, %v562_v23  ;;  %511 = vmatprep.mubr.msk.bf16.mxu1 %vm208_vm0, %v571_v24 }
  0x61   :  { %289 = vmatmul.mubr.bf16.gmra.mrb[8].mxu0 %v564_v25  ;;  %321 = vmatmul.mubr.bf16.gmra.mrb[8].mxu1 %v573_v26 }
  0x62   :  { %508 = vmatprep.mubr.msk.bf16.mxu0 %vm208_vm0, %v568_v27  ;;  %512 = vmatprep.mubr.msk.bf16.mxu1 %vm208_vm0, %v574_v28 }
  0x69   :  { %297 = vmatmul.mubr.bf16.gmra.mrb[12].mxu0 %v570_v29  ;;  %329 = vmatmul.mubr.bf16.gmra.mrb[12].mxu1 %v576_v30 }
 0x124   :  { %v274_v31 = vpop.f32.mrb[0].mxu0  ;;  %v739_v32 = vpop.f32.mrb[0].mxu1 }
 0x125   :  { %338 = vst.msk [vmem:[#allocation7] sm:$0xff] %vm337_vm3, %v274_v31  ;;  %v391_v33 = vmul.f32 %v274_v31, %v274_v31  ;;  %v276_v34 = vpop.f32.mrb[1].mxu0  ;;  %346 = vst.msk [vmem:[#allocation7 + $0x40] sm:$0xff] %vm337_vm3, %v739_v32  ;;  %v308_v35 = vpop.f32.mrb[1].mxu1  ;;  %v354_v38 = vsel %vm337_vm3, %v274_v31, 0.0  ;;  %v399_v28 = vmul.f32 %v739_v32, %v739_v32 }
 0x126   :  { %v277_v36 = vpop.f32.mrb[2].mxu0  ;;  %v744_v37 = vpop.f32.mrb[2].mxu1 }
 0x127   :  { %339 = vst.msk [vmem:[#allocation7 + $0x8] sm:$0xff] %vm337_vm3, %v277_v36  ;;  %v355_v39 = vsel %vm337_vm3, %v277_v36, 0.0  ;;  %v392_v40 = vmul.f32 %v277_v36, %v277_v36  ;;  %v279_v41 = vpop.f32.mrb[3].mxu0  ;;  %347 = vst.msk [vmem:[#allocation7 + $0x48] sm:$0xff] %vm337_vm3, %v744_v37  ;;  %v311_v42 = vpop.f32.mrb[3].mxu1  ;;  %v407_v44 = vsel %vm337_vm3, %v391_v33, 0.0 }
 0x128   :  { %v356_v43 = vadd.f32 %v355_v39, %v354_v38 }
 0x129   :  { %v408_v45 = vsel %vm337_vm3, %v392_v40, 0.0 }
 0x12a   :  { %v409_v46 = vadd.f32 %v408_v45, %v407_v44 }
 0x12c   :  { %v282_v47 = vpop.f32.mrb[4].mxu0  ;;  %v753_v48 = vpop.f32.mrb[4].mxu1 }
 0x12d   :  { %340 = vst.msk [vmem:[#allocation7 + $0x10] sm:$0xff] %vm337_vm3, %v282_v47  ;;  %v357_v49 = vsel %vm337_vm3, %v282_v47, 0.0  ;;  %v393_v50 = vmul.f32 %v282_v47, %v282_v47  ;;  %v284_v51 = vpop.f32.mrb[5].mxu0  ;;  %348 = vst.msk [vmem:[#allocation7 + $0x50] sm:$0xff] %vm337_vm3, %v753_v48  ;;  %v316_v52 = vpop.f32.mrb[5].mxu1 }
 0x12e   :  { %v358_v53 = vadd.f32 %v357_v49, %v356_v43  ;;  %v285_v54 = vpop.f32.mrb[6].mxu0  ;;  %v759_v55 = vpop.f32.mrb[6].mxu1 }
 0x12f   :  { %v410_v56 = vsel %vm337_vm3, %v393_v50, 0.0  ;;  %341 = vst.msk [vmem:[#allocation7 + $0x18] sm:$0xff] %vm337_vm3, %v285_v54  ;;  %v359_v57 = vsel %vm337_vm3, %v285_v54, 0.0  ;;  %v394_v58 = vmul.f32 %v285_v54, %v285_v54  ;;  %v287_v59 = vpop.f32.mrb[7].mxu0  ;;  %349 = vst.msk [vmem:[#allocation7 + $0x58] sm:$0xff] %vm337_vm3, %v759_v55  ;;  %v319_v60 = vpop.f32.mrb[7].mxu1 }
 0x130   :  { %v411_v61 = vadd.f32 %v410_v56, %v409_v46  ;;  %v360_v62 = vadd.f32 %v359_v57, %v358_v53 }
 0x131   :  { %v412_v63 = vsel %vm337_vm3, %v394_v58, 0.0 }
 0x132   :  { %v413_v0 = vadd.f32 %v412_v63, %v411_v61 }
 0x134   :  { %v290_v1 = vpop.f32.mrb[8].mxu0  ;;  %v767_v2 = vpop.f32.mrb[8].mxu1 }
 0x135   :  { %342 = vst.msk [vmem:[#allocation7 + $0x20] sm:$0xff] %vm337_vm3, %v290_v1  ;;  %v361_v3 = vsel %vm337_vm3, %v290_v1, 0.0  ;;  %v395_v4 = vmul.f32 %v290_v1, %v290_v1  ;;  %v292_v5 = vpop.f32.mrb[9].mxu0  ;;  %350 = vst.msk [vmem:[#allocation7 + $0x60] sm:$0xff] %vm337_vm3, %v767_v2  ;;  %v324_v6 = vpop.f32.mrb[9].mxu1 }
 0x136   :  { %v362_v7 = vadd.f32 %v361_v3, %v360_v62  ;;  %v293_v8 = vpop.f32.mrb[10].mxu0  ;;  %v773_v9 = vpop.f32.mrb[10].mxu1 }
 0x137   :  { %v414_v10 = vsel %vm337_vm3, %v395_v4, 0.0  ;;  %343 = vst.msk [vmem:[#allocation7 + $0x28] sm:$0xff] %vm337_vm3, %v293_v8  ;;  %v363_v11 = vsel %vm337_vm3, %v293_v8, 0.0  ;;  %v396_v12 = vmul.f32 %v293_v8, %v293_v8  ;;  %v295_v13 = vpop.f32.mrb[11].mxu0  ;;  %351 = vst.msk [vmem:[#allocation7 + $0x68] sm:$0xff] %vm337_vm3, %v773_v9  ;;  %v327_v14 = vpop.f32.mrb[11].mxu1 }
 0x138   :  { %v415_v15 = vadd.f32 %v414_v10, %v413_v0  ;;  %v364_v16 = vadd.f32 %v363_v11, %v362_v7 }
 0x139   :  { %v416_v17 = vsel %vm337_vm3, %v396_v12, 0.0 }
 0x13a   :  { %v417_v18 = vadd.f32 %v416_v17, %v415_v15 }
 0x13c   :  { %v298_v19 = vpop.f32.mrb[12].mxu0  ;;  %v330_v20 = vpop.f32.mrb[12].mxu1 }
 0x13d   :  { %344 = vst.msk [vmem:[#allocation7 + $0x30] sm:$0xff] %vm337_vm3, %v298_v19  ;;  %v365_v21 = vsel %vm337_vm3, %v298_v19, 0.0  ;;  %v397_v22 = vmul.f32 %v298_v19, %v298_v19  ;;  %v300_v23 = vpop.f32.mrb[13].mxu0  ;;  %352 = vst.msk [vmem:[#allocation7 + $0x70] sm:$0xff] %vm337_vm3, %v330_v20  ;;  %v332_v24 = vpop.f32.mrb[13].mxu1 }
 0x13e   :  { %v366_v25 = vadd.f32 %v365_v21, %v364_v16  ;;  %v301_v26 = vpop.f32.mrb[14].mxu0  ;;  %v333_v27 = vpop.f32.mrb[14].mxu1 }
 0x13f   :  { %v418_v29 = vsel %vm337_vm3, %v397_v22, 0.0  ;;  %345 = vst.msk [vmem:[#allocation7 + $0x38] sm:$0xff] %vm337_vm3, %v301_v26  ;;  %v367_v30 = vsel %vm337_vm3, %v301_v26, 0.0  ;;  %v398_v31 = vmul.f32 %v301_v26, %v301_v26  ;;  %v303_v33 = vpop.f32.mrb[15].mxu0  ;;  %353 = vst.msk [vmem:[#allocation7 + $0x78] sm:$0xff] %vm337_vm3, %v333_v27  ;;  %v335_v34 = vpop.f32.mrb[15].mxu1 }
 0x140   :  { %v419_v35 = vadd.f32 %v418_v29, %v417_v18  ;;  %v368_v36 = vadd.f32 %v367_v30, %v366_v25 }
 0x141   :  { %632 = shalt.err (!%p629_p6)
}
 0x142   :  { %s633_s16 = scalar_lea.hbm %s860_s2, 2048 }
 0x143   :  { %p634_p7 = scmp.ne.s32.totalorder %s860_s2, %s633_s16  ;;  %p637_p8 = scmp.lt.u32.totalorder %s633_s16, %s860_s2 }
 0x145   :  { %p639_p9 = pnand %p637_p8, %p634_p7 }
 0x147   :  { %642 = shalt.err (!%p639_p9)
}
 0x148   :  { %458 = dma.vmem_to_hbm [thread:$0]  %s784_s12, 2048, %s860_s2, [#allocation4], %s674_s22, %s674_s22, %s675_s23   ;;  %v369_v38 = vsel %vm337_vm3, %v739_v32, 0.0  ;;  %v400_v39 = vmul.f32 %v744_v37, %v744_v37  ;;  %v420_v40 = vsel %vm337_vm3, %v398_v31, 0.0  ;;  %v422_v43 = vsel %vm337_vm3, %v399_v28, 0.0 }
 0x149   :  { %v370_v41 = vadd.f32 %v369_v38, %v368_v36  ;;  %v421_v42 = vadd.f32 %v420_v40, %v419_v35  ;;  %v371_v44 = vsel %vm337_vm3, %v744_v37, 0.0  ;;  %v401_v45 = vmul.f32 %v753_v48, %v753_v48  ;;  %s682_s2 = smov [#allocation8]  }
 0x14a   :  { %v424_v49 = vsel %vm337_vm3, %v400_v39, 0.0  ;;  %v373_v32 = vsel %vm337_vm3, %v753_v48, 0.0  ;;  %v402_v50 = vmul.f32 %v759_v55, %v759_v55  ;;  %v375_v37 = vsel %vm337_vm3, %v759_v55, 0.0  ;;  %s465_s22 = sshll.u32 %s682_s2, 4  ;;  %s466_s22 = int_to_ptr.vmem [resolvable:$true] %s465_s22 }
 0x14b   :  { %v372_v46 = vadd.f32 %v371_v44, %v370_v41  ;;  %v423_v47 = vadd.f32 %v422_v43, %v421_v42  ;;  %v426_v53 = vsel %vm337_vm3, %v401_v45, 0.0  ;;  %v403_v54 = vmul.f32 %v767_v2, %v767_v2  ;;  %s643_s23 = scalar_lea.vmem %s466_s22, 32  ;;  %p648_p11 = scmp.lt.s32.totalorder %s466_s22, %s466_s22 }
 0x14c   :  { %v428_v58 = vsel %vm337_vm3, %v402_v50, 0.0  ;;  %v377_v48 = vsel %vm337_vm3, %v767_v2, 0.0  ;;  %v404_v59 = vmul.f32 %v773_v9, %v773_v9  ;;  %v405_v60 = vmul.f32 %v330_v20, %v330_v20  ;;  %p644_p10 = scmp.ne.s32.totalorder %s466_s22, %s643_s23  ;;  %p649_p12 = scmp.lt.s32.totalorder %s643_s23, %s643_s23 }
 0x14d   :  { %v425_v51 = vadd.f32 %v424_v49, %v423_v47  ;;  %v374_v52 = vadd.f32 %v373_v32, %v372_v46  ;;  %v430_v63 = vsel %vm337_vm3, %v403_v54, 0.0  ;;  %v379_v55 = vsel %vm337_vm3, %v773_v9, 0.0 }
 0x14e   :  { %v381_v0 = vsel %vm337_vm3, %v330_v20, 0.0  ;;  %v432_v4 = vsel %vm337_vm3, %v404_v59, 0.0  ;;  %v434_v5 = vsel %vm337_vm3, %v405_v60, 0.0  ;;  %v406_v2 = vmul.f32 %v333_v27, %v333_v27  ;;  %p650_p13 = por %p649_p12, %p648_p11 }
 0x14f   :  { %v376_v56 = vadd.f32 %v375_v37, %v374_v52  ;;  %v427_v57 = vadd.f32 %v426_v53, %v425_v51  ;;  %v383_v8 = vsel %vm337_vm3, %v333_v27, 0.0  ;;  %vm445_vm4 = vcmask 254976  }
 0x150   :  { %v436_v12 = vsel %vm337_vm3, %v406_v2, 0.0  ;;  %p651_p0 = pnand %p650_p13, %p644_p10 }
 0x151   :  { %v378_v61 = vadd.f32 %v377_v48, %v376_v56  ;;  %v429_v62 = vadd.f32 %v428_v58, %v427_v57 }
 0x153   :  { %v431_v1 = vadd.f32 %v430_v63, %v429_v62  ;;  %v380_v3 = vadd.f32 %v379_v55, %v378_v61 }
 0x155   :  { %v433_v6 = vadd.f32 %v432_v4, %v431_v1  ;;  %v382_v7 = vadd.f32 %v381_v0, %v380_v3 }
 0x157   :  { %v435_v10 = vadd.f32 %v434_v5, %v433_v6  ;;  %v384_v11 = vadd.f32 %v383_v8, %v382_v7 }
 0x159   :  { %v385_v13 = vrot.slane %v384_v11, 4  ;;  %v437_v14 = vadd.f32 %v436_v12, %v435_v10 }
 0x15b   :  { %v386_v9 = vadd.f32 %v385_v13, %v384_v11  ;;  %v438_v15 = vrot.slane %v437_v14, 4 }
 0x15d   :  { %v387_v16 = vrot.slane %v386_v9, 2  ;;  %v439_v17 = vadd.f32 %v438_v15, %v437_v14 }
 0x15f   :  { %v388_v18 = vadd.f32 %v387_v16, %v386_v9  ;;  %v440_v19 = vrot.slane %v439_v17, 2 }
 0x161   :  { %v389_v20 = vrot.slane %v388_v18, 1  ;;  %v441_v21 = vadd.f32 %v440_v19, %v439_v17 }
 0x163   :  { %v442_v22 = vrot.slane %v441_v21, 1  ;;  %v390_v23 = vadd.f32 %v389_v20, %v388_v18 }
 0x165   :  { %v443_v24 = vadd.f32 %v442_v22, %v441_v21 }
 0x167   :  { %v444_v25 = vsel %vm233_vm1, %v390_v23, %v443_v24 }
 0x168   :  { %446 = vst.msk [vmem:[#allocation8] sm:$0x3] %vm445_vm4, %v444_v25 }
 0x169   :  { %654 = shalt.err (!%p651_p0)
}
 0x16a   :  { %s655_s27 = scalar_lea.hbm %s861_s3, 32 }
 0x16b   :  { %p656_p1 = scmp.ne.s32.totalorder %s861_s3, %s655_s27  ;;  %p659_p2 = scmp.lt.u32.totalorder %s655_s27, %s861_s3 }
 0x16d   :  { %p661_p3 = pnand %p659_p2, %p656_p1 }
 0x16f   :  { %664 = shalt.err (!%p661_p3)
}
 0x170   :  { %468 = dma.vmem_to_hbm [thread:$0]  %s466_s22, 32, %s861_s3, [#allocation9]  }
 0x171   :  { %669 = dma.done.wait [#allocation4], 2048  }
 0x172   :  { %670 = vsyncadd [#allocation4], 4294965248 }
 0x173   :  { %671 = dma.done.wait [#allocation9], 32  }
 0x174   :  { %672 = vsyncadd [#allocation9], 4294967264 }
 0x175   :  { %475 = vsyncpa [#allocation3], 1 }
 0x176   :  { %476 = vsyncpa [#allocation6], 1 }
 0x177   :  { %477 = vsyncpa [#allocation4], 1 }
 0x178   :  { %478 = vsyncpa [#allocation9], 1 }

// kernel: _lambda_.9
= control target key start
LH: loop header
LB: loop body
LE: loop exit
PB: predicated region body
PF: predicated region fallthrough
CT: control target
= control target key end

     0   :  { %9 = vsyncpa [#allocation3], 0  ;;  %s1163_s0 = inlined_call_operand.hbm [shape: bf16[128,288], index: 0, kind: input, shape index: {}]   ;;  %s1164_s1 = inlined_call_operand.hbm [shape: bf16[288,32], index: 1, kind: input, shape index: {}]   ;;  %s1165_s2 = inlined_call_operand.hbm [shape: f32[128,32], index: 2, kind: output, shape index: {0}]   ;;  %s1166_s3 = inlined_call_operand.hbm [shape: f32[1,2,32], index: 3, kind: output, shape index: {1}]  }
   0x1   :  { %10 = vsyncpa [#allocation6], 0 }
   0x2   :  { %11 = vsyncpa [#allocation4], 0 }
   0x3   :  { %12 = vsyncpa [#allocation9], 0  ;;  %s1017_s12 = smov [#allocation2]   ;;  %s921_s16 = scalar_lea.hbm %s1163_s0, 3072 }
   0x4   :  { %s18_s13 = sshll.u32 %s1017_s12, 4  ;;  %p922_p0 = scmp.ne.s32.totalorder %s1163_s0, %s921_s16  ;;  %s19_s13 = int_to_ptr.vmem [resolvable:$true] %s18_s13 }
   0x5   :  { %p925_p1 = scmp.lt.u32.totalorder %s921_s16, %s1163_s0 }
   0x7   :  { %p927_p2 = pnand %p925_p1, %p922_p0 }
   0x9   :  { %930 = shalt.err (!%p927_p2)
}
   0xa   :  { %s931_s21 = scalar_lea.vmem %s19_s13, 3072  ;;  %p936_p4 = scmp.lt.s32.totalorder %s19_s13, %s19_s13 }
   0xb   :  { %p932_p3 = scmp.ne.s32.totalorder %s19_s13, %s931_s21  ;;  %p937_p5 = scmp.lt.s32.totalorder %s931_s21, %s931_s21 }
   0xd   :  { %p938_p6 = por %p937_p5, %p936_p4 }
   0xf   :  { %p939_p7 = pnand %p938_p6, %p932_p3 }
  0x11   :  { %942 = shalt.err (!%p939_p7)
}
  0x12   :  { %s1018_s22 = smov 192   ;;  %s1019_s23 = smov 12  }
  0x13   :  { %24 = dma.hbm_to_vmem [thread:$0]  %s1163_s0, 3072, %s19_s13, [#allocation3], %s1018_s22, %s1018_s22, %s1019_s23  }
  0x14   :  { %s1020_s26 = smov [#allocation5]   ;;  %s943_s30 = scalar_lea.hbm %s1164_s1, 2304 }
  0x15   :  { %s30_s27 = sshll.u32 %s1020_s26, 4  ;;  %p944_p8 = scmp.ne.s32.totalorder %s1164_s1, %s943_s30  ;;  %s31_s27 = int_to_ptr.vmem [resolvable:$true] %s30_s27 }
  0x16   :  { %p947_p9 = scmp.lt.u32.totalorder %s943_s30, %s1164_s1 }
  0x18   :  { %p949_p10 = pnand %p947_p9, %p944_p8 }
  0x1a   :  { %952 = shalt.err (!%p949_p10)
}
  0x1b   :  { %s953_s8 = scalar_lea.vmem %s31_s27, 2304  ;;  %p958_p12 = scmp.lt.s32.totalorder %s31_s27, %s31_s27 }
  0x1c   :  { %p954_p11 = scmp.ne.s32.totalorder %s31_s27, %s953_s8  ;;  %p959_p13 = scmp.lt.s32.totalorder %s953_s8, %s953_s8 }
  0x1e   :  { %p960_p0 = por %p959_p13, %p958_p12 }
  0x20   :  { %p961_p1 = pnand %p960_p0, %p954_p11 }
  0x22   :  { %964 = shalt.err (!%p961_p1)
}
  0x23   :  { %s1021_s0 = smov 64   ;;  %s1022_s9 = smov 4  }
  0x24   :  { %36 = dma.hbm_to_vmem [thread:$0]  %s1164_s1, 2304, %s31_s27, [#allocation6], %s1021_s0, %s1021_s0, %s1022_s9  }
  0x25   :  { %1009 = dma.done.wait [#allocation3], 3072  }
  0x26   :  { %1010 = vsyncadd [#allocation3], 4294964224 }
  0x27   :  { %1011 = dma.done.wait [#allocation6], 2304  }
  0x28   :  { %1012 = vsyncadd [#allocation6], 4294964992  ;;  %v871_v0 = vld [vmem:[#allocation5 + $0x40] sm:$0xff]   ;;  %v873_v2 = vld [vmem:[#allocation5 + $0x48] sm:$0xff]   ;;  %vm340_vm0 = vcmask 261120   ;;  %s1023_s1 = smov [#allocation7]  }
  0x29   :  { %v872_v1 = vld [vmem:[#allocation5] sm:$0xff]   ;;  %751 = vmatprep.subr.bf16.mxu0 %v871_v0  ;;  %845 = vmatprep.subr.bf16.mxu1 %v871_v0  ;;  %v874_v3 = vld [vmem:[#allocation5 + $0x8] sm:$0xff]   ;;  %v875_v4 = vld [vmem:[#allocation5 + $0x50] sm:$0xff]   ;;  %s674_s12 = sshll.u32 %s1023_s1, 4  ;;  %s675_s12 = int_to_ptr.vmem [resolvable:$true] %s674_s12 }
  0x2a   :  { %752 = vmatpush3.bf16.msra.mxu0 %v872_v1  ;;  %853 = vmatpush3.bf16.msra.mxu1 %v872_v1  ;;  %v876_v5 = vld [vmem:[#allocation5 + $0x10] sm:$0xff]   ;;  %v877_v6 = vld [vmem:[#allocation5 + $0x58] sm:$0xff]   ;;  %v879_v8 = vld [vmem:[#allocation5 + $0x60] sm:$0xff]   ;;  %s965_s13 = scalar_lea.vmem %s675_s12, 2048  ;;  %p970_p3 = scmp.lt.s32.totalorder %s675_s12, %s675_s12 }
  0x2b   :  { %753 = vmatprep.subr.bf16.mxu0 %v873_v2  ;;  %846 = vmatprep.subr.bf16.mxu1 %v873_v2  ;;  %v878_v7 = vld [vmem:[#allocation5 + $0x18] sm:$0xff]   ;;  %v880_v9 = vld [vmem:[#allocation5 + $0x20] sm:$0xff]   ;;  %v881_v10 = vld [vmem:[#allocation5 + $0x68] sm:$0xff]   ;;  %p966_p2 = scmp.ne.s32.totalorder %s675_s12, %s965_s13  ;;  %p971_p4 = scmp.lt.s32.totalorder %s965_s13, %s965_s13 }
  0x2c   :  { %v889_v11 = vld [vmem:[#allocation2 + $0x4] ss:$12 sps:$4 sm:$0xff]   ;;  %v892_v12 = vld [vmem:[#allocation2 + $0x94] ss:$12 sps:$4 sm:$0xff]   ;;  %v882_v13 = vld [vmem:[#allocation5 + $0x28] sm:$0xff]  }
  0x2d   :  { %v883_v14 = vld [vmem:[#allocation5 + $0x70] sm:$0xff]   ;;  %397 = vmatprep.mubr.bf16.mxu0 %v889_v11  ;;  %445 = vmatprep.mubr.bf16.mxu1 %v892_v12  ;;  %v885_v16 = vld [vmem:[#allocation5 + $0x78] sm:$0xff]   ;;  %v887_v18 = vld [vmem:[#allocation2] ss:$12 sps:$4 sm:$0xff]   ;;  %p972_p5 = por %p971_p4, %p970_p3 }
  0x2e   :  { %754 = vmatpush3.bf16.msra.mxu0 %v874_v3  ;;  %854 = vmatpush3.bf16.msra.mxu1 %v874_v3  ;;  %v884_v15 = vld [vmem:[#allocation5 + $0x30] sm:$0xff]   ;;  %v886_v17 = vld [vmem:[#allocation5 + $0x38] sm:$0xff]   ;;  %v893_v19 = vld [vmem:[#allocation5 + $0x80] sm:$0xff]  }
  0x2f   :  { %755 = vmatprep.subr.bf16.mxu0 %v875_v4  ;;  %847 = vmatprep.subr.bf16.mxu1 %v875_v4  ;;  %v890_v20 = vld [vmem:[#allocation2 + $0x90] ss:$12 sps:$4 sm:$0xff]   ;;  %v896_v22 = vld [vmem:[#allocation2 + $0xac] ss:$12 sps:$4 sm:$0xff]   ;;  %v899_v25 = vld [vmem:[#allocation2 + $0xa8] ss:$12 sps:$4 sm:$0xff]   ;;  %p973_p6 = pnand %p972_p5, %p966_p2 }
  0x30   :  { %v894_v21 = vld [vmem:[#allocation2 + $0x1c] ss:$12 sps:$4 sm:$0xff]   ;;  %v898_v24 = vld [vmem:[#allocation2 + $0x18] ss:$12 sps:$4 sm:$0xff]   ;;  %v901_v26 = vld [vmem:[#allocation2 + $0x34] ss:$12 sps:$4 sm:$0xff]  }
  0x31   :  { %v900_v23 = vld [vmem:[#allocation5 + $0x88] sm:$0xff]   ;;  %v904_v28 = vld [vmem:[#allocation2 + $0x30] ss:$12 sps:$4 sm:$0xff]   ;;  %v908_v31 = vld [vmem:[#allocation2 + $0x38] ss:$12 sps:$4 sm:$0xff]  }
  0x32   :  { %756 = vmatpush3.bf16.msra.mxu0 %v876_v5  ;;  %855 = vmatpush3.bf16.msra.mxu1 %v876_v5  ;;  %v903_v27 = vld [vmem:[#allocation2 + $0x8] ss:$12 sps:$4 sm:$0xff]   ;;  %v905_v29 = vld [vmem:[#allocation2 + $0x20] ss:$12 sps:$4 sm:$0xff]   ;;  %v910_v33 = vld [vmem:[#allocation2 + $0x50] ss:$12 sps:$4 sm:$0xff]  }
  0x33   :  { %757 = vmatprep.subr.bf16.mxu0 %v877_v6  ;;  %848 = vmatprep.subr.bf16.mxu1 %v877_v6  ;;  %v906_v30 = vld [vmem:[#allocation2 + $0x4c] ss:$12 sps:$4 sm:$0xff]   ;;  %v909_v32 = vld [vmem:[#allocation2 + $0x48] ss:$12 sps:$4 sm:$0xff]   ;;  %v911_v34 = vld [vmem:[#allocation2 + $0x64] ss:$12 sps:$4 sm:$0xff]  }
  0x34   :  { %v913_v35 = vld [vmem:[#allocation2 + $0x68] ss:$12 sps:$4 sm:$0xff]   ;;  %v914_v36 = vld [vmem:[#allocation2 + $0x60] ss:$12 sps:$4 sm:$0xff]   ;;  %v918_v39 = vld [vmem:[#allocation2 + $0x98] ss:$12 sps:$4 sm:$0xff]  }
  0x35   :  { %v915_v37 = vld [vmem:[#allocation2 + $0x80] ss:$12 sps:$4 sm:$0xff]   ;;  %v916_v38 = vld [vmem:[#allocation2 + $0x7c] ss:$12 sps:$4 sm:$0xff]   ;;  %v919_v40 = vld [vmem:[#allocation2 + $0x78] ss:$12 sps:$4 sm:$0xff]  }
  0x36   :  { %758 = vmatpush3.bf16.msra.mxu0 %v878_v7  ;;  %856 = vmatpush3.bf16.msra.mxu1 %v878_v7  ;;  %v920_v41 = vld [vmem:[#allocation2 + $0xb0] ss:$12 sps:$4 sm:$0xff]  }
  0x37   :  { %759 = vmatprep.subr.bf16.mxu0 %v879_v8  ;;  %849 = vmatprep.subr.bf16.mxu1 %v879_v8 }
  0x3a   :  { %760 = vmatpush3.bf16.msra.mxu0 %v880_v9  ;;  %857 = vmatpush3.bf16.msra.mxu1 %v880_v9 }
  0x3b   :  { %761 = vmatprep.subr.bf16.mxu0 %v881_v10  ;;  %850 = vmatprep.subr.bf16.mxu1 %v881_v10 }
  0x3e   :  { %762 = vmatpush3.bf16.msra.mxu0 %v882_v13  ;;  %858 = vmatpush3.bf16.msra.mxu1 %v882_v13 }
  0x3f   :  { %763 = vmatprep.subr.bf16.mxu0 %v883_v14  ;;  %851 = vmatprep.subr.bf16.mxu1 %v883_v14 }
  0x42   :  { %764 = vmatpush3.bf16.msra.mxu0 %v884_v15  ;;  %859 = vmatpush3.bf16.msra.mxu1 %v884_v15 }
  0x43   :  { %765 = vmatprep.subr.bf16.mxu0 %v885_v16  ;;  %852 = vmatprep.subr.bf16.mxu1 %v885_v16 }
  0x46   :  { %766 = vmatpush3.bf16.msra.mxu0 %v886_v17  ;;  %860 = vmatpush3.bf16.msra.mxu1 %v886_v17 }
  0x47   :  { %825 = vmatprep.subr.bf16.mxu1 %v893_v19 }
  0x49   :  { %398 = vmatmul.mubr.bf16.vlgmr.msra.gmra.mrb[0].mxu0 %v887_v18  ;;  %446 = vmatmul.mubr.bf16.vlgmr.msra.gmra.mrb[0].mxu1 %v890_v20 }
  0x4a   :  { %826 = vmatpush3.bf16.msra.mxu1 %v893_v19  ;;  %405 = vmatprep.mubr.bf16.mxu0 %v894_v21 }
  0x4b   :  { %453 = vmatprep.mubr.bf16.mxu1 %v896_v22  ;;  %827 = vmatprep.subr.bf16.mxu1 %v900_v23 }
  0x4e   :  { %828 = vmatpush3.bf16.msra.mxu1 %v900_v23 }
  0x51   :  { %406 = vmatmul.mubr.bf16.gmra.mrb[4].mxu0 %v898_v24  ;;  %454 = vmatmul.mubr.bf16.gmra.mrb[4].mxu1 %v899_v25 }
  0x52   :  { %413 = vmatprep.mubr.bf16.mxu0 %v901_v26  ;;  %829 = vmatprep.mubr.msk.bf16.mxu1 %vm340_vm0, %v903_v27 }
  0x59   :  { %414 = vmatmul.mubr.bf16.gmra.mrb[8].mxu0 %v904_v28  ;;  %830 = vmatmul.mubr.msk.bf16.vlgmr.msra.gmra.mrb[8].mxu1 %vm340_vm0, %v905_v29 }
  0x5a   :  { %421 = vmatprep.mubr.bf16.mxu0 %v906_v30  ;;  %833 = vmatprep.mubr.msk.bf16.mxu1 %vm340_vm0, %v908_v31 }
  0x61   :  { %422 = vmatmul.mubr.bf16.gmra.mrb[12].mxu0 %v909_v32  ;;  %834 = vmatmul.mubr.msk.bf16.gmra.mrb[12].mxu1 %vm340_vm0, %v910_v33 }
  0x62   :  { %429 = vmatprep.mubr.bf16.mxu0 %v911_v34  ;;  %837 = vmatprep.mubr.msk.bf16.mxu1 %vm340_vm0, %v913_v35 }
  0x69   :  { %430 = vmatmul.mubr.bf16.gmra.mrb[16].mxu0 %v914_v36  ;;  %838 = vmatmul.mubr.msk.bf16.gmra.mrb[16].mxu1 %vm340_vm0, %v915_v37 }
  0x6a   :  { %437 = vmatprep.mubr.bf16.mxu0 %v916_v38  ;;  %841 = vmatprep.mubr.msk.bf16.mxu1 %vm340_vm0, %v918_v39 }
  0x71   :  { %438 = vmatmul.mubr.bf16.gmra.mrb[20].mxu0 %v919_v40  ;;  %842 = vmatmul.mubr.msk.bf16.gmra.mrb[20].mxu1 %vm340_vm0, %v920_v41 }
 0x11c   :  { %v767_v42 = vpop.f32.mrb[0].mxu0  ;;  %v803_v43 = vpop.f32.mrb[0].mxu1 }
 0x11d   :  { %v768_v44 = vpop.f32.mrb[1].mxu0  ;;  %v804_v45 = vpop.f32.mrb[1].mxu1 }
 0x11e   :  { %v769_v46 = vadd.f32 %v768_v44, %v767_v42  ;;  %v770_v47 = vpop.f32.mrb[2].mxu0  ;;  %v1079_v48 = vadd.f32 %v804_v45, %v803_v43  ;;  %v806_v49 = vpop.f32.mrb[2].mxu1 }
 0x11f   :  { %v771_v50 = vpop.f32.mrb[3].mxu0  ;;  %v807_v51 = vpop.f32.mrb[3].mxu1 }
 0x120   :  { %v772_v52 = vadd.f32 %v771_v50, %v770_v47  ;;  %v1081_v53 = vadd.f32 %v807_v51, %v806_v49 }
 0x124   :  { %v773_v54 = vpop.f32.mrb[4].mxu0  ;;  %v809_v55 = vpop.f32.mrb[4].mxu1 }
 0x125   :  { %v774_v56 = vpop.f32.mrb[5].mxu0  ;;  %v810_v57 = vpop.f32.mrb[5].mxu1 }
 0x126   :  { %v775_v58 = vadd.f32 %v774_v56, %v773_v54  ;;  %v776_v59 = vpop.f32.mrb[6].mxu0  ;;  %v1083_v60 = vadd.f32 %v810_v57, %v809_v55  ;;  %v812_v61 = vpop.f32.mrb[6].mxu1 }
 0x127   :  { %v777_v62 = vpop.f32.mrb[7].mxu0  ;;  %v813_v63 = vpop.f32.mrb[7].mxu1 }
 0x128   :  { %v778_v0 = vadd.f32 %v777_v62, %v776_v59  ;;  %v1085_v1 = vadd.f32 %v813_v63, %v812_v61 }
 0x12c   :  { %v779_v2 = vpop.f32.mrb[8].mxu0  ;;  %v831_v3 = vpop.f32.mrb[8].mxu1 }
 0x12d   :  { %v505_v4 = vadd.f32 %v831_v3, %v775_v58  ;;  %v780_v5 = vpop.f32.mrb[9].mxu0  ;;  %v496_v6 = vpop.f32.mrb[9].mxu1 }
 0x12e   :  { %v781_v7 = vadd.f32 %v780_v5, %v779_v2  ;;  %v497_v8 = vadd.f32 %v769_v46, %v496_v6  ;;  %v782_v9 = vpop.f32.mrb[10].mxu0  ;;  %v832_v10 = vpop.f32.mrb[10].mxu1 }
 0x12f   :  { %561 = vst.msk [vmem:[#allocation7 + $0x10] sm:$0xff] %vm340_vm0, %v505_v4  ;;  %v508_v11 = vadd.f32 %v832_v10, %v778_v0  ;;  %v783_v12 = vpop.f32.mrb[11].mxu0  ;;  %v499_v13 = vpop.f32.mrb[11].mxu1  ;;  %v614_v17 = vmul.f32 %v505_v4, %v505_v4  ;;  %v578_v23 = vsel %vm340_vm0, %v505_v4, 0.0 }
 0x130   :  { %559 = vst.msk [vmem:[#allocation7] sm:$0xff] %vm340_vm0, %v497_v8  ;;  %v612_v14 = vmul.f32 %v497_v8, %v497_v8  ;;  %v784_v15 = vadd.f32 %v783_v12, %v782_v9  ;;  %v500_v16 = vadd.f32 %v772_v52, %v499_v13  ;;  %v575_v18 = vsel %vm340_vm0, %v497_v8, 0.0 }
 0x131   :  { %562 = vst.msk [vmem:[#allocation7 + $0x18] sm:$0xff] %vm340_vm0, %v508_v11  ;;  %v615_v21 = vmul.f32 %v508_v11, %v508_v11  ;;  %v631_v32 = vsel %vm340_vm0, %v614_v17, 0.0  ;;  %v580_v33 = vsel %vm340_vm0, %v508_v11, 0.0 }
 0x132   :  { %560 = vst.msk [vmem:[#allocation7 + $0x8] sm:$0xff] %vm340_vm0, %v500_v16  ;;  %v576_v19 = vsel %vm340_vm0, %v500_v16, 0.0  ;;  %v613_v20 = vmul.f32 %v500_v16, %v500_v16  ;;  %v628_v24 = vsel %vm340_vm0, %v612_v14, 0.0 }
 0x133   :  { %v577_v22 = vadd.f32 %v576_v19, %v575_v18  ;;  %v633_v38 = vsel %vm340_vm0, %v615_v21, 0.0 }
 0x134   :  { %v629_v25 = vsel %vm340_vm0, %v613_v20, 0.0  ;;  %v785_v26 = vpop.f32.mrb[12].mxu0  ;;  %v835_v27 = vpop.f32.mrb[12].mxu1 }
 0x135   :  { %v579_v28 = vadd.f32 %v578_v23, %v577_v22  ;;  %v630_v29 = vadd.f32 %v629_v25, %v628_v24  ;;  %v786_v30 = vpop.f32.mrb[13].mxu0  ;;  %v512_v31 = vpop.f32.mrb[13].mxu1 }
 0x136   :  { %v787_v34 = vadd.f32 %v786_v30, %v785_v26  ;;  %v513_v35 = vadd.f32 %v781_v7, %v512_v31  ;;  %v788_v36 = vpop.f32.mrb[14].mxu0  ;;  %v836_v37 = vpop.f32.mrb[14].mxu1 }
 0x137   :  { %v632_v39 = vadd.f32 %v631_v32, %v630_v29  ;;  %v581_v40 = vadd.f32 %v580_v33, %v579_v28  ;;  %v789_v41 = vpop.f32.mrb[15].mxu0  ;;  %v515_v42 = vpop.f32.mrb[15].mxu1 }
 0x138   :  { %v521_v43 = vadd.f32 %v835_v27, %v787_v34  ;;  %563 = vst.msk [vmem:[#allocation7 + $0x20] sm:$0xff] %vm340_vm0, %v513_v35  ;;  %v582_v44 = vsel %vm340_vm0, %v513_v35, 0.0  ;;  %v616_v45 = vmul.f32 %v513_v35, %v513_v35  ;;  %v790_v46 = vadd.f32 %v789_v41, %v788_v36 }
 0x139   :  { %v583_v47 = vadd.f32 %v582_v44, %v581_v40  ;;  %v634_v49 = vadd.f32 %v633_v38, %v632_v39  ;;  %v516_v50 = vadd.f32 %v784_v15, %v515_v42 }
 0x13a   :  { %565 = vst.msk [vmem:[#allocation7 + $0x30] sm:$0xff] %vm340_vm0, %v521_v43  ;;  %v635_v51 = vsel %vm340_vm0, %v616_v45, 0.0  ;;  %v524_v52 = vadd.f32 %v836_v37, %v790_v46  ;;  %v618_v54 = vmul.f32 %v521_v43, %v521_v43  ;;  %v586_v62 = vsel %vm340_vm0, %v521_v43, 0.0 }
 0x13b   :  { %v636_v55 = vadd.f32 %v635_v51, %v634_v49  ;;  %564 = vst.msk [vmem:[#allocation7 + $0x28] sm:$0xff] %vm340_vm0, %v516_v50  ;;  %v584_v56 = vsel %vm340_vm0, %v516_v50, 0.0  ;;  %v617_v57 = vmul.f32 %v516_v50, %v516_v50 }
 0x13c   :  { %566 = vst.msk [vmem:[#allocation7 + $0x38] sm:$0xff] %vm340_vm0, %v524_v52  ;;  %v585_v58 = vadd.f32 %v584_v56, %v583_v47  ;;  %v791_v59 = vpop.f32.mrb[16].mxu0  ;;  %v839_v61 = vpop.f32.mrb[16].mxu1  ;;  %v619_v63 = vmul.f32 %v524_v52, %v524_v52  ;;  %v639_v9 = vsel %vm340_vm0, %v618_v54, 0.0  ;;  %v588_v10 = vsel %vm340_vm0, %v524_v52, 0.0 }
 0x13d   :  { %v637_v0 = vsel %vm340_vm0, %v617_v57, 0.0  ;;  %v792_v2 = vpop.f32.mrb[17].mxu0  ;;  %v528_v3 = vpop.f32.mrb[17].mxu1 }
 0x13e   :  { %v587_v4 = vadd.f32 %v586_v62, %v585_v58  ;;  %v638_v5 = vadd.f32 %v637_v0, %v636_v55  ;;  %v793_v6 = vadd.f32 %v792_v2, %v791_v59  ;;  %v794_v7 = vpop.f32.mrb[18].mxu0  ;;  %v840_v8 = vpop.f32.mrb[18].mxu1  ;;  %v641_v17 = vsel %vm340_vm0, %v619_v63, 0.0 }
 0x13f   :  { %v795_v11 = vpop.f32.mrb[19].mxu0  ;;  %v531_v12 = vpop.f32.mrb[19].mxu1 }
 0x140   :  { %v640_v13 = vadd.f32 %v639_v9, %v638_v5  ;;  %v796_v14 = vadd.f32 %v795_v11, %v794_v7  ;;  %v529_v15 = vadd.f32 %v793_v6, %v528_v3  ;;  %v589_v16 = vadd.f32 %v588_v10, %v587_v4 }
 0x142   :  { %567 = vst.msk [vmem:[#allocation7 + $0x40] sm:$0xff] %vm340_vm0, %v529_v15  ;;  %v590_v18 = vsel %vm340_vm0, %v529_v15, 0.0  ;;  %v620_v19 = vmul.f32 %v529_v15, %v529_v15  ;;  %v642_v20 = vadd.f32 %v641_v17, %v640_v13  ;;  %v532_v21 = vadd.f32 %v796_v14, %v531_v12 }
 0x143   :  { %v591_v22 = vadd.f32 %v590_v18, %v589_v16 }
 0x144   :  { %v643_v23 = vsel %vm340_vm0, %v620_v19, 0.0  ;;  %568 = vst.msk [vmem:[#allocation7 + $0x48] sm:$0xff] %vm340_vm0, %v532_v21  ;;  %v592_v24 = vsel %vm340_vm0, %v532_v21, 0.0  ;;  %v621_v25 = vmul.f32 %v532_v21, %v532_v21  ;;  %v797_v26 = vpop.f32.mrb[20].mxu0  ;;  %v843_v27 = vpop.f32.mrb[20].mxu1 }
 0x145   :  { %v644_v28 = vadd.f32 %v643_v23, %v642_v20  ;;  %v593_v29 = vadd.f32 %v592_v24, %v591_v22  ;;  %v553_v30 = vadd.f32 %v843_v27, %v1083_v60  ;;  %v798_v31 = vpop.f32.mrb[21].mxu0  ;;  %v544_v32 = vpop.f32.mrb[21].mxu1 }
 0x146   :  { %v645_v33 = vsel %vm340_vm0, %v621_v25, 0.0  ;;  %v799_v34 = vadd.f32 %v798_v31, %v797_v26  ;;  %v545_v35 = vadd.f32 %v1079_v48, %v544_v32  ;;  %v800_v36 = vpop.f32.mrb[22].mxu0  ;;  %v844_v37 = vpop.f32.mrb[22].mxu1 }
 0x147   :  { %v646_v38 = vadd.f32 %v645_v33, %v644_v28  ;;  %573 = vst.msk [vmem:[#allocation7 + $0x70] sm:$0xff] %vm340_vm0, %v553_v30  ;;  %v556_v39 = vadd.f32 %v844_v37, %v1085_v1  ;;  %v801_v40 = vpop.f32.mrb[23].mxu0  ;;  %v547_v41 = vpop.f32.mrb[23].mxu1 }
 0x148   :  { %v537_v42 = vadd.f32 %v839_v61, %v799_v34  ;;  %571 = vst.msk [vmem:[#allocation7 + $0x60] sm:$0xff] %vm340_vm0, %v545_v35  ;;  %v802_v60 = vadd.f32 %v801_v40, %v800_v36  ;;  %v548_v43 = vadd.f32 %v1081_v53, %v547_v41  ;;  %v624_v47 = vmul.f32 %v545_v35, %v545_v35 }
 0x149   :  { %574 = vst.msk [vmem:[#allocation7 + $0x78] sm:$0xff] %vm340_vm0, %v556_v39 }
 0x14a   :  { %569 = vst.msk [vmem:[#allocation7 + $0x50] sm:$0xff] %vm340_vm0, %v537_v42  ;;  %v594_v48 = vsel %vm340_vm0, %v537_v42, 0.0  ;;  %v622_v44 = vmul.f32 %v537_v42, %v537_v42  ;;  %v540_v45 = vadd.f32 %v840_v8, %v802_v60  ;;  %572 = vst.msk [vmem:[#allocation7 + $0x68] sm:$0xff] %vm340_vm0, %v548_v43 }
 0x14b   :  { %v595_v1 = vadd.f32 %v594_v48, %v593_v29 }
 0x14c   :  { %v647_v46 = vsel %vm340_vm0, %v622_v44, 0.0  ;;  %570 = vst.msk [vmem:[#allocation7 + $0x58] sm:$0xff] %vm340_vm0, %v540_v45  ;;  %v596_v49 = vsel %vm340_vm0, %v540_v45, 0.0  ;;  %v623_v50 = vmul.f32 %v540_v45, %v540_v45 }
 0x14d   :  { %v648_v51 = vadd.f32 %v647_v46, %v646_v38  ;;  %v597_v53 = vadd.f32 %v596_v49, %v595_v1 }
 0x14e   :  { %976 = shalt.err (!%p973_p6)
}
 0x14f   :  { %s977_s16 = scalar_lea.hbm %s1165_s2, 2048 }
 0x150   :  { %p978_p7 = scmp.ne.s32.totalorder %s1165_s2, %s977_s16  ;;  %p981_p8 = scmp.lt.u32.totalorder %s977_s16, %s1165_s2 }
 0x152   :  { %p983_p9 = pnand %p981_p8, %p978_p7 }
 0x154   :  { %986 = shalt.err (!%p983_p9)
}
 0x155   :  { %s1024_s21 = smov 128   ;;  %s1025_s22 = smov 8   ;;  %v598_v52 = vsel %vm340_vm0, %v545_v35, 0.0  ;;  %v649_v54 = vsel %vm340_vm0, %v623_v50, 0.0  ;;  %v625_v55 = vmul.f32 %v548_v43, %v548_v43  ;;  %v626_v58 = vmul.f32 %v553_v30, %v553_v30 }
 0x156   :  { %680 = dma.vmem_to_hbm [thread:$0]  %s675_s12, 2048, %s1165_s2, [#allocation4], %s1024_s21, %s1024_s21, %s1025_s22   ;;  %v650_v56 = vadd.f32 %v649_v54, %v648_v51  ;;  %v599_v57 = vadd.f32 %v598_v52, %v597_v53  ;;  %v651_v59 = vsel %vm340_vm0, %v624_v47, 0.0  ;;  %v600_v61 = vsel %vm340_vm0, %v548_v43, 0.0 }
 0x157   :  { %v602_v0 = vsel %vm340_vm0, %v553_v30, 0.0  ;;  %v627_v2 = vmul.f32 %v556_v39, %v556_v39  ;;  %v653_v3 = vsel %vm340_vm0, %v625_v55, 0.0  ;;  %v655_v6 = vsel %vm340_vm0, %v626_v58, 0.0  ;;  %s1026_s2 = smov [#allocation8]  }
 0x158   :  { %v601_v62 = vadd.f32 %v600_v61, %v599_v57  ;;  %v652_v63 = vadd.f32 %v651_v59, %v650_v56  ;;  %v604_v7 = vsel %vm340_vm0, %v556_v39, 0.0  ;;  %s687_s25 = sshll.u32 %s1026_s2, 4  ;;  %vm665_vm1 = vcmask 1040384   ;;  %s688_s25 = int_to_ptr.vmem [resolvable:$true] %s687_s25 }
 0x159   :  { %v657_v10 = vsel %vm340_vm0, %v627_v2, 0.0  ;;  %vm667_vm2 = vcmask 254976   ;;  %s987_s26 = scalar_lea.vmem %s688_s25, 32  ;;  %p992_p11 = scmp.lt.s32.totalorder %s688_s25, %s688_s25 }
 0x15a   :  { %v603_v4 = vadd.f32 %v602_v0, %v601_v62  ;;  %v654_v5 = vadd.f32 %v653_v3, %v652_v63  ;;  %p988_p10 = scmp.ne.s32.totalorder %s688_s25, %s987_s26  ;;  %p993_p12 = scmp.lt.s32.totalorder %s987_s26, %s987_s26 }
 0x15c   :  { %v605_v8 = vadd.f32 %v604_v7, %v603_v4  ;;  %v656_v9 = vadd.f32 %v655_v6, %v654_v5  ;;  %p994_p13 = por %p993_p12, %p992_p11 }
 0x15e   :  { %v606_v11 = vrot.slane %v605_v8, 4  ;;  %v658_v12 = vadd.f32 %v657_v10, %v656_v9  ;;  %p995_p0 = pnand %p994_p13, %p988_p10 }
 0x160   :  { %v607_v13 = vadd.f32 %v606_v11, %v605_v8  ;;  %v659_v14 = vrot.slane %v658_v12, 4 }
 0x162   :  { %v608_v15 = vrot.slane %v607_v13, 2  ;;  %v660_v16 = vadd.f32 %v659_v14, %v658_v12 }
 0x164   :  { %v609_v17 = vadd.f32 %v608_v15, %v607_v13  ;;  %v661_v18 = vrot.slane %v660_v16, 2 }
 0x166   :  { %v610_v19 = vrot.slane %v609_v17, 1  ;;  %v662_v20 = vadd.f32 %v661_v18, %v660_v16 }
 0x168   :  { %v663_v21 = vrot.slane %v662_v20, 1  ;;  %v611_v22 = vadd.f32 %v610_v19, %v609_v17 }
 0x16a   :  { %v664_v23 = vadd.f32 %v663_v21, %v662_v20 }
 0x16c   :  { %v666_v24 = vsel %vm665_vm1, %v611_v22, %v664_v23 }
 0x16d   :  { %668 = vst.msk [vmem:[#allocation8] sm:$0x3] %vm667_vm2, %v666_v24 }
 0x16e   :  { %998 = shalt.err (!%p995_p0)
}
 0x16f   :  { %s999_s29 = scalar_lea.hbm %s1166_s3, 32 }
 0x170   :  { %p1000_p1 = scmp.ne.s32.totalorder %s1166_s3, %s999_s29  ;;  %p1003_p2 = scmp.lt.u32.totalorder %s999_s29, %s1166_s3 }
 0x172   :  { %p1005_p3 = pnand %p1003_p2, %p1000_p1 }
 0x174   :  { %1008 = shalt.err (!%p1005_p3)
}
 0x175   :  { %690 = dma.vmem_to_hbm [thread:$0]  %s688_s25, 32, %s1166_s3, [#allocation9]  }
 0x176   :  { %1013 = dma.done.wait [#allocation4], 2048  }
 0x177   :  { %1014 = vsyncadd [#allocation4], 4294965248 }
 0x178   :  { %1015 = dma.done.wait [#allocation9], 32  }
 0x179   :  { %1016 = vsyncadd [#allocation9], 4294967264 }
 0x17a   :  { %697 = vsyncpa [#allocation3], 1 }
 0x17b   :  { %698 = vsyncpa [#allocation6], 1 }
 0x17c   :  { %699 = vsyncpa [#allocation4], 1 }
 0x17d   :  { %700 = vsyncpa [#allocation9], 1 }

// kernel: _lambda_.13
= control target key start
LH: loop header
LB: loop body
LE: loop exit
PB: predicated region body
PF: predicated region fallthrough
CT: control target
= control target key end

     0   :  { %8 = vsyncpa [#allocation3], 0  ;;  %s388_s0 = inlined_call_operand.hbm [shape: f32[128,64], index: 0, kind: input, shape index: {}]   ;;  %s389_s1 = inlined_call_operand.hbm [shape: f32[1,64], index: 1, kind: input, shape index: {}]   ;;  %s390_s2 = inlined_call_operand.hbm [shape: f32[1,64], index: 2, kind: input, shape index: {}]   ;;  %s391_s3 = inlined_call_operand.hbm [shape: f32[128,64], index: 3, kind: output, shape index: {}]  }
   0x1   :  { %9 = vsyncpa [#allocation6], 0 }
   0x2   :  { %10 = vsyncpa [#allocation4], 0  ;;  %s267_s12 = smov [#allocation5]   ;;  %s268_s14 = smov [#allocation2]  }
   0x3   :  { %s29_s13 = sshll.u32 %s267_s12, 4  ;;  %s16_s15 = sshll.u32 %s268_s14, 4  ;;  %s30_s13 = int_to_ptr.vmem [resolvable:$true] %s29_s13  ;;  %s293_s15 = int_to_ptr.vmem [resolvable:$true] %s16_s15 }
   0x4   :  { %s173_s18 = scalar_lea.hbm %s389_s1, 16 }
   0x5   :  { %p174_p0 = scmp.ne.s32.totalorder %s389_s1, %s173_s18  ;;  %p177_p1 = scmp.lt.u32.totalorder %s173_s18, %s389_s1 }
   0x7   :  { %p179_p2 = pnand %p177_p1, %p174_p0 }
   0x9   :  { %182 = shalt.err (!%p179_p2)
}
   0xa   :  { %s183_s23 = scalar_lea.vmem %s30_s13, 16  ;;  %s187_s24 = scalar_lea.vmem %s30_s13, 32 }
   0xb   :  { %p184_p3 = scmp.ne.s32.totalorder %s30_s13, %s183_s23  ;;  %p188_p4 = scmp.lt.s32.totalorder %s30_s13, %s30_s13 }
   0xc   :  { %p189_p5 = scmp.lt.s32.totalorder %s187_s24, %s183_s23 }
   0xe   :  { %p190_p6 = por %p189_p5, %p188_p4 }
  0x10   :  { %p191_p7 = pnand %p190_p6, %p184_p3 }
  0x12   :  { %194 = shalt.err (!%p191_p7)
}
  0x13   :  { %32 = dma.hbm_to_vmem [thread:$0]  %s389_s1, 16, %s30_s13, [#allocation6]  }
  0x14   :  { %s195_s29 = scalar_lea.hbm %s388_s0, 2048 }
  0x15   :  { %p196_p8 = scmp.ne.s32.totalorder %s388_s0, %s195_s29  ;;  %p199_p9 = scmp.lt.u32.totalorder %s195_s29, %s388_s0 }
  0x17   :  { %p201_p10 = pnand %p199_p9, %p196_p8 }
  0x19   :  { %204 = shalt.err (!%p201_p10)
}
  0x1a   :  { %s205_s7 = scalar_lea.vmem %s293_s15, 2048  ;;  %p210_p12 = scmp.lt.s32.totalorder %s293_s15, %s293_s15 }
  0x1b   :  { %p206_p11 = scmp.ne.s32.totalorder %s293_s15, %s205_s7  ;;  %p211_p13 = scmp.lt.s32.totalorder %s205_s7, %s205_s7 }
  0x1d   :  { %p212_p0 = por %p211_p13, %p210_p12 }
  0x1f   :  { %p213_p1 = pnand %p212_p0, %p206_p11 }
  0x21   :  { %216 = shalt.err (!%p213_p1)
}
  0x22   :  { %s269_s1 = smov 128   ;;  %s270_s8 = smov 8  }
  0x23   :  { %22 = dma.hbm_to_vmem [thread:$0]  %s388_s0, 2048, %s293_s15, [#allocation3], %s269_s1, %s269_s1, %s270_s8  }
  0x24   :  { %s271_s11 = smov [#allocation7]   ;;  %s217_s16 = scalar_lea.hbm %s390_s2, 16 }
  0x25   :  { %s39_s12 = sshll.u32 %s271_s11, 4  ;;  %p218_p2 = scmp.ne.s32.totalorder %s390_s2, %s217_s16  ;;  %s40_s12 = int_to_ptr.vmem [resolvable:$true] %s39_s12 }
  0x26   :  { %p221_p3 = scmp.lt.u32.totalorder %s217_s16, %s390_s2 }
  0x28   :  { %p223_p4 = pnand %p221_p3, %p218_p2 }
  0x2a   :  { %226 = shalt.err (!%p223_p4)
}
  0x2b   :  { %s227_s21 = scalar_lea.vmem %s40_s12, 16  ;;  %s231_s0 = scalar_lea.vmem %s40_s12, 32 }
  0x2c   :  { %p228_p5 = scmp.ne.s32.totalorder %s40_s12, %s227_s21  ;;  %p232_p6 = scmp.lt.s32.totalorder %s40_s12, %s40_s12 }
  0x2d   :  { %p233_p7 = scmp.lt.s32.totalorder %s231_s0, %s227_s21 }
  0x2f   :  { %p234_p8 = por %p233_p7, %p232_p6 }
  0x31   :  { %p235_p9 = pnand %p234_p8, %p228_p5 }
  0x33   :  { %238 = shalt.err (!%p235_p9)
}
  0x34   :  { %42 = dma.hbm_to_vmem [thread:$0]  %s390_s2, 16, %s40_s12, [#allocation6]  }
  0x35   :  { %261 = dma.done.wait [#allocation3], 2048  }
  0x36   :  { %262 = vsyncadd [#allocation3], 4294965248 }
  0x37   :  { %263 = dma.done.wait [#allocation6], 32  }
  0x38   :  { %264 = vsyncadd [#allocation6], 4294967264  ;;  %v52_v0 = vld [vmem:[#allocation2] sm:$0xff]  ;;  %v53_v4 = vld [vmem:[#allocation2 + $0x8] sm:$0xff]  ;;  %vm130_vm0 = vcmask 523264   ;;  %s272_s2 = smov [#allocation8]  }
  0x39   :  { %v165_v1 = vld [vmem:[#allocation5] ss:$0 sm:$0xff]  ;;  %v339_v2 = vld [vmem:[#allocation7] ss:$0 sm:$0xff]  ;;  %v54_v5 = vld [vmem:[#allocation2 + $0x10] sm:$0xff]  ;;  %s152_s23 = sshll.u32 %s272_s2, 4  ;;  %s153_s23 = int_to_ptr.vmem [resolvable:$true] %s152_s23 }
  0x3a   :  { %v75_v3 = vmul.f32 %v165_v1, %v52_v0  ;;  %v55_v6 = vld [vmem:[#allocation2 + $0x18] sm:$0xff]  ;;  %v76_v7 = vmul.f32 %v165_v1, %v53_v4  ;;  %v77_v8 = vmul.f32 %v165_v1, %v54_v5  ;;  %v56_v10 = vld [vmem:[#allocation2 + $0x20] sm:$0xff]  ;;  %v57_v11 = vld [vmem:[#allocation2 + $0x28] sm:$0xff]  ;;  %s239_s24 = scalar_lea.vmem %s153_s23, 2048  ;;  %p244_p11 = scmp.lt.s32.totalorder %s153_s23, %s153_s23 }
  0x3b   :  { %v78_v9 = vmul.f32 %v165_v1, %v55_v6  ;;  %v58_v12 = vld [vmem:[#allocation2 + $0x30] sm:$0xff]  ;;  %v79_v14 = vmul.f32 %v165_v1, %v56_v10  ;;  %v80_v15 = vmul.f32 %v165_v1, %v57_v11  ;;  %v59_v17 = vld [vmem:[#allocation2 + $0x38] sm:$0xff]  ;;  %v60_v22 = vld [vmem:[#allocation2 + $0x40] sm:$0xff]  ;;  %p240_p10 = scmp.ne.s32.totalorder %s153_s23, %s239_s24  ;;  %p245_p12 = scmp.lt.s32.totalorder %s239_s24, %s239_s24 }
  0x3c   :  { %v98_v13 = vadd.f32 %v339_v2, %v75_v3  ;;  %v81_v16 = vmul.f32 %v165_v1, %v58_v12  ;;  %v99_v18 = vadd.f32 %v339_v2, %v76_v7  ;;  %v100_v19 = vadd.f32 %v339_v2, %v77_v8  ;;  %v61_v27 = vld [vmem:[#allocation2 + $0x48] sm:$0xff]  ;;  %v62_v28 = vld [vmem:[#allocation2 + $0x50] sm:$0xff]  ;;  %v63_v29 = vld [vmem:[#allocation2 + $0x58] sm:$0xff] }
  0x3d   :  { %v101_v20 = vadd.f32 %v339_v2, %v78_v9  ;;  %v82_v21 = vmul.f32 %v165_v1, %v59_v17  ;;  %v102_v24 = vadd.f32 %v339_v2, %v79_v14  ;;  %v103_v25 = vadd.f32 %v339_v2, %v80_v15  ;;  %v64_v34 = vld [vmem:[#allocation2 + $0x60] sm:$0xff]  ;;  %v65_v35 = vld [vmem:[#allocation2 + $0x68] sm:$0xff]  ;;  %v66_v36 = vld [vmem:[#allocation2 + $0x70] sm:$0xff]  ;;  %p246_p13 = por %p245_p12, %p244_p11 }
  0x3e   :  { %v114_v23 = vmax.f32 %v98_v13, 0.0  ;;  %v104_v26 = vadd.f32 %v339_v2, %v81_v16  ;;  %v115_v30 = vmax.f32 %v99_v18, 0.0  ;;  %v116_v31 = vmax.f32 %v100_v19, 0.0  ;;  %v67_v41 = vld [vmem:[#allocation2 + $0x78] sm:$0xff] }
  0x3f   :  { %v117_v32 = vmax.f32 %v101_v20, 0.0  ;;  %v105_v33 = vadd.f32 %v339_v2, %v82_v21  ;;  %v118_v37 = vmax.f32 %v102_v24, 0.0  ;;  %v119_v38 = vmax.f32 %v103_v25, 0.0  ;;  %p247_p0 = pnand %p246_p13, %p240_p10 }
  0x40   :  { %131 = vst.msk [vmem:[#allocation8] sm:$0xff] %vm130_vm0, %v114_v23  ;;  %v120_v39 = vmax.f32 %v104_v26, 0.0  ;;  %v83_v40 = vmul.f32 %v165_v1, %v60_v22  ;;  %132 = vst.msk [vmem:[#allocation8 + $0x8] sm:$0xff] %vm130_vm0, %v115_v30  ;;  %v84_v43 = vmul.f32 %v165_v1, %v61_v27  ;;  %v85_v44 = vmul.f32 %v165_v1, %v62_v28 }
  0x41   :  { %133 = vst.msk [vmem:[#allocation8 + $0x10] sm:$0xff] %vm130_vm0, %v116_v31  ;;  %134 = vst.msk [vmem:[#allocation8 + $0x18] sm:$0xff] %vm130_vm0, %v117_v32  ;;  %v121_v42 = vmax.f32 %v105_v33, 0.0  ;;  %v86_v45 = vmul.f32 %v165_v1, %v63_v29  ;;  %v87_v47 = vmul.f32 %v165_v1, %v64_v34  ;;  %v88_v48 = vmul.f32 %v165_v1, %v65_v35 }
  0x42   :  { %135 = vst.msk [vmem:[#allocation8 + $0x20] sm:$0xff] %vm130_vm0, %v118_v37  ;;  %136 = vst.msk [vmem:[#allocation8 + $0x28] sm:$0xff] %vm130_vm0, %v119_v38  ;;  %v106_v46 = vadd.f32 %v339_v2, %v83_v40  ;;  %v89_v49 = vmul.f32 %v165_v1, %v66_v36  ;;  %v107_v50 = vadd.f32 %v339_v2, %v84_v43 }
  0x43   :  { %137 = vst.msk [vmem:[#allocation8 + $0x30] sm:$0xff] %vm130_vm0, %v120_v39  ;;  %138 = vst.msk [vmem:[#allocation8 + $0x38] sm:$0xff] %vm130_vm0, %v121_v42  ;;  %v108_v51 = vadd.f32 %v339_v2, %v85_v44  ;;  %v109_v52 = vadd.f32 %v339_v2, %v86_v45  ;;  %v90_v53 = vmul.f32 %v165_v1, %v67_v41 }
  0x44   :  { %v122_v54 = vmax.f32 %v106_v46, 0.0  ;;  %v110_v55 = vadd.f32 %v339_v2, %v87_v47  ;;  %v111_v56 = vadd.f32 %v339_v2, %v88_v48  ;;  %v112_v57 = vadd.f32 %v339_v2, %v89_v49 }
  0x45   :  { %v123_v58 = vmax.f32 %v107_v50, 0.0  ;;  %v124_v59 = vmax.f32 %v108_v51, 0.0  ;;  %v125_v60 = vmax.f32 %v109_v52, 0.0  ;;  %v113_v61 = vadd.f32 %v339_v2, %v90_v53 }
  0x46   :  { %139 = vst.msk [vmem:[#allocation8 + $0x40] sm:$0xff] %vm130_vm0, %v122_v54  ;;  %v126_v62 = vmax.f32 %v110_v55, 0.0  ;;  %v127_v63 = vmax.f32 %v111_v56, 0.0  ;;  %v128_v0 = vmax.f32 %v112_v57, 0.0 }
  0x47   :  { %140 = vst.msk [vmem:[#allocation8 + $0x48] sm:$0xff] %vm130_vm0, %v123_v58  ;;  %141 = vst.msk [vmem:[#allocation8 + $0x50] sm:$0xff] %vm130_vm0, %v124_v59  ;;  %v129_v1 = vmax.f32 %v113_v61, 0.0 }
  0x48   :  { %142 = vst.msk [vmem:[#allocation8 + $0x58] sm:$0xff] %vm130_vm0, %v125_v60  ;;  %143 = vst.msk [vmem:[#allocation8 + $0x60] sm:$0xff] %vm130_vm0, %v126_v62 }
  0x49   :  { %144 = vst.msk [vmem:[#allocation8 + $0x68] sm:$0xff] %vm130_vm0, %v127_v63  ;;  %145 = vst.msk [vmem:[#allocation8 + $0x70] sm:$0xff] %vm130_vm0, %v128_v0 }
  0x4a   :  { %146 = vst.msk [vmem:[#allocation8 + $0x78] sm:$0xff] %vm130_vm0, %v129_v1 }
  0x4b   :  { %250 = shalt.err (!%p247_p0)
}
  0x4c   :  { %s251_s27 = scalar_lea.hbm %s391_s3, 2048 }
  0x4d   :  { %p252_p1 = scmp.ne.s32.totalorder %s391_s3, %s251_s27  ;;  %p255_p2 = scmp.lt.u32.totalorder %s251_s27, %s391_s3 }
  0x4f   :  { %p257_p3 = pnand %p255_p2, %p252_p1 }
  0x51   :  { %260 = shalt.err (!%p257_p3)
}
  0x52   :  { %158 = dma.vmem_to_hbm [thread:$0]  %s153_s23, 2048, %s391_s3, [#allocation4], %s269_s1, %s269_s1, %s270_s8  }
  0x53   :  { %265 = dma.done.wait [#allocation4], 2048  }
  0x54   :  { %266 = vsyncadd [#allocation4], 4294965248 }
  0x55   :  { %162 = vsyncpa [#allocation3], 1 }
  0x56   :  { %163 = vsyncpa [#allocation6], 1 }
  0x57   :  { %164 = vsyncpa [#allocation4], 1 }

// kernel: _lambda_.12
= control target key start
LH: loop header
LB: loop body
LE: loop exit
PB: predicated region body
PF: predicated region fallthrough
CT: control target
= control target key end

     0   :  { %11 = vsyncpa [#allocation3], 0  ;;  %s933_s0 = inlined_call_operand.hbm [shape: f32[128,32], index: 0, kind: input, shape index: {}]   ;;  %s934_s1 = inlined_call_operand.hbm [shape: f32[1,32], index: 1, kind: input, shape index: {}]   ;;  %s935_s2 = inlined_call_operand.hbm [shape: f32[1,32], index: 2, kind: input, shape index: {}]   ;;  %s936_s3 = inlined_call_operand.hbm [shape: bf16[32,64], index: 3, kind: input, shape index: {}]   ;;  %s937_s4 = inlined_call_operand.hbm [shape: f32[128,64], index: 4, kind: output, shape index: {0}]   ;;  %s938_s5 = inlined_call_operand.hbm [shape: f32[1,2,64], index: 5, kind: output, shape index: {1}]  }
   0x1   :  { %12 = vsyncpa [#allocation6], 0 }
   0x2   :  { %13 = vsyncpa [#allocation9], 0 }
   0x3   :  { %14 = vsyncpa [#allocation4], 0 }
   0x4   :  { %15 = vsyncpa [#allocation12], 0  ;;  %s703_s18 = smov [#allocation5]   ;;  %s704_s20 = smov [#allocation2]  }
   0x5   :  { %s34_s19 = sshll.u32 %s703_s18, 4  ;;  %s21_s21 = sshll.u32 %s704_s20, 4  ;;  %s35_s19 = int_to_ptr.vmem [resolvable:$true] %s34_s19  ;;  %s745_s21 = int_to_ptr.vmem [resolvable:$true] %s21_s21 }
   0x6   :  { %s561_s24 = scalar_lea.hbm %s934_s1, 16 }
   0x7   :  { %p562_p0 = scmp.ne.s32.totalorder %s934_s1, %s561_s24  ;;  %p565_p1 = scmp.lt.u32.totalorder %s561_s24, %s934_s1 }
   0x9   :  { %p567_p2 = pnand %p565_p1, %p562_p0 }
   0xb   :  { %570 = shalt.err (!%p567_p2)
}
   0xc   :  { %s571_s29 = scalar_lea.vmem %s35_s19, 16  ;;  %s575_s30 = scalar_lea.vmem %s35_s19, 32 }
   0xd   :  { %p572_p3 = scmp.ne.s32.totalorder %s35_s19, %s571_s29  ;;  %p576_p4 = scmp.lt.s32.totalorder %s35_s19, %s35_s19 }
   0xe   :  { %p577_p5 = scmp.lt.s32.totalorder %s575_s30, %s571_s29 }
  0x10   :  { %p578_p6 = por %p577_p5, %p576_p4 }
  0x12   :  { %p579_p7 = pnand %p578_p6, %p572_p3 }
  0x14   :  { %582 = shalt.err (!%p579_p7)
}
  0x15   :  { %37 = dma.hbm_to_vmem [thread:$0]  %s934_s1, 16, %s35_s19, [#allocation6]  }
  0x16   :  { %s583_s10 = scalar_lea.hbm %s933_s0, 2048 }
  0x17   :  { %p584_p8 = scmp.ne.s32.totalorder %s933_s0, %s583_s10  ;;  %p587_p9 = scmp.lt.u32.totalorder %s583_s10, %s933_s0 }
  0x19   :  { %p589_p10 = pnand %p587_p9, %p584_p8 }
  0x1b   :  { %592 = shalt.err (!%p589_p10)
}
  0x1c   :  { %s593_s15 = scalar_lea.vmem %s745_s21, 2048  ;;  %p598_p12 = scmp.lt.s32.totalorder %s745_s21, %s745_s21 }
  0x1d   :  { %p594_p11 = scmp.ne.s32.totalorder %s745_s21, %s593_s15  ;;  %p599_p13 = scmp.lt.s32.totalorder %s593_s15, %s593_s15 }
  0x1f   :  { %p600_p0 = por %p599_p13, %p598_p12 }
  0x21   :  { %p601_p1 = pnand %p600_p0, %p594_p11 }
  0x23   :  { %604 = shalt.err (!%p601_p1)
}
  0x24   :  { %s705_s1 = smov 128   ;;  %s706_s16 = smov 8  }
  0x25   :  { %27 = dma.hbm_to_vmem [thread:$0]  %s933_s0, 2048, %s745_s21, [#allocation3], %s705_s1, %s705_s1, %s706_s16  }
  0x26   :  { %s707_s19 = smov [#allocation7]   ;;  %s708_s22 = smov [#allocation8]  }
  0x27   :  { %s44_s20 = sshll.u32 %s707_s19, 4  ;;  %s53_s23 = sshll.u32 %s708_s22, 4  ;;  %s45_s20 = int_to_ptr.vmem [resolvable:$true] %s44_s20  ;;  %s779_s23 = int_to_ptr.vmem [resolvable:$true] %s53_s23 }
  0x28   :  { %s605_s26 = scalar_lea.hbm %s935_s2, 16 }
  0x29   :  { %p606_p2 = scmp.ne.s32.totalorder %s935_s2, %s605_s26  ;;  %p609_p3 = scmp.lt.u32.totalorder %s605_s26, %s935_s2 }
  0x2b   :  { %p611_p4 = pnand %p609_p3, %p606_p2 }
  0x2d   :  { %614 = shalt.err (!%p611_p4)
}
  0x2e   :  { %s615_s0 = scalar_lea.vmem %s45_s20, 16  ;;  %s619_s21 = scalar_lea.vmem %s45_s20, 32 }
  0x2f   :  { %p616_p5 = scmp.ne.s32.totalorder %s45_s20, %s615_s0  ;;  %p620_p6 = scmp.lt.s32.totalorder %s45_s20, %s45_s20 }
  0x30   :  { %p621_p7 = scmp.lt.s32.totalorder %s619_s21, %s615_s0 }
  0x32   :  { %p622_p8 = por %p621_p7, %p620_p6 }
  0x34   :  { %p623_p9 = pnand %p622_p8, %p616_p5 }
  0x36   :  { %626 = shalt.err (!%p623_p9)
}
  0x37   :  { %47 = dma.hbm_to_vmem [thread:$0]  %s935_s2, 16, %s45_s20, [#allocation6]  }
  0x38   :  { %s627_s10 = scalar_lea.hbm %s936_s3, 256 }
  0x39   :  { %p628_p10 = scmp.ne.s32.totalorder %s936_s3, %s627_s10  ;;  %p631_p11 = scmp.lt.u32.totalorder %s627_s10, %s936_s3 }
  0x3b   :  { %p633_p12 = pnand %p631_p11, %p628_p10 }
  0x3d   :  { %636 = shalt.err (!%p633_p12)
}
  0x3e   :  { %s637_s15 = scalar_lea.vmem %s779_s23, 256  ;;  %p642_p0 = scmp.lt.s32.totalorder %s779_s23, %s779_s23 }
  0x3f   :  { %p638_p13 = scmp.ne.s32.totalorder %s779_s23, %s637_s15  ;;  %p643_p1 = scmp.lt.s32.totalorder %s637_s15, %s637_s15 }
  0x41   :  { %p644_p2 = por %p643_p1, %p642_p0 }
  0x43   :  { %p645_p3 = pnand %p644_p2, %p638_p13 }
  0x45   :  { %648 = shalt.err (!%p645_p3)
}
  0x46   :  { %s709_s2 = smov 64   ;;  %s710_s17 = smov 4  }
  0x47   :  { %59 = dma.hbm_to_vmem [thread:$0]  %s936_s3, 256, %s779_s23, [#allocation9], %s709_s2, %s709_s2, %s710_s17  }
  0x48   :  { %693 = dma.done.wait [#allocation3], 2048  }
  0x49   :  { %694 = vsyncadd [#allocation3], 4294965248 }
  0x4a   :  { %695 = dma.done.wait [#allocation6], 32  }
  0x4b   :  { %696 = vsyncadd [#allocation6], 4294967264 }
  0x4c   :  { %697 = dma.done.wait [#allocation9], 256  }
  0x4d   :  { %698 = vsyncadd [#allocation9], 4294967040  ;;  %v711_v0 = vmov 0.0|0.0   ;;  %v559_v1 = vld [vmem:[#allocation8] sm:$0xff]   ;;  %v560_v2 = vld [vmem:[#allocation8 + $0x8] sm:$0xff]   ;;  %vm242_vm0 = vcmask 261120  }
  0x4e   :  { %535 = vmatprep.mubr.bf16.mxu1 %v711_v0  ;;  %523 = vmatprep.subr.bf16.mxu0 %v559_v1  ;;  %v73_v3 = vld [vmem:[#allocation2] sm:$0xff]  ;;  %v712_v9 = vmov 0.0   ;;  %vm364_vm1 = vcmask 523264   ;;  %s713_s3 = smov [#allocation10]  }
  0x4f   :  { %v508_v4 = vld [vmem:[#allocation5] ss:$0 sm:$0xff]  ;;  %v509_v5 = vld [vmem:[#allocation7] ss:$0 sm:$0xff]  ;;  %543 = vmatprep.subr.bf16.mxu1 %v559_v1  ;;  %524 = vmatpush3.bf16.msra.mxu0 %v559_v1  ;;  %s480_s20 = sshll.u32 %s713_s3, 4  ;;  %s481_s20 = int_to_ptr.vmem [resolvable:$true] %s480_s20 }
  0x50   :  { %v96_v6 = vmul.f32 %v508_v4, %v73_v3  ;;  %545 = vmatpush3.bf16.msra.mxu1 %v559_v1  ;;  %525 = vmatprep.subr.bf16.mxu0 %v560_v2  ;;  %s649_s22 = scalar_lea.vmem %s481_s20, 2048  ;;  %p654_p5 = scmp.lt.s32.totalorder %s481_s20, %s481_s20 }
  0x51   :  { %544 = vmatprep.subr.bf16.mxu1 %v560_v2  ;;  %p650_p4 = scmp.ne.s32.totalorder %s481_s20, %s649_s22  ;;  %p655_p6 = scmp.lt.s32.totalorder %s649_s22, %s649_s22 }
  0x52   :  { %v119_v7 = vadd.f32 %v509_v5, %v96_v6 }
  0x53   :  { %526 = vmatpush3.bf16.msra.mxu0 %v560_v2  ;;  %p656_p7 = por %p655_p6, %p654_p5 }
  0x54   :  { %v135_v8 = vmax.f32 %v119_v7, 0.0  ;;  %546 = vmatpush3.bf16.msra.mxu1 %v560_v2 }
  0x55   :  { %p657_p8 = pnand %p656_p7, %p650_p4 }
  0x56   :  { %v218_v10 = vpack.c.bf16 %v712_v9, %v135_v8 }
  0x57   :  { %536 = vmatmul.mubr.bf16.vlgmr.msra.gmra.mrb[0].mxu1 %v711_v0 }
  0x58   :  { %527 = vmatprep.mubr.msk.bf16.mxu0 %vm242_vm0, %v218_v10  ;;  %539 = vmatprep.mubr.bf16.mxu1 %v711_v0 }
  0x59   :  { %528 = vmatmul.mubr.bf16.vlgmr.msra.gmra.mrb[0].mxu0 %v711_v0 }
  0x5a   :  { %531 = vmatprep.mubr.bf16.mxu0 %v711_v0 }
  0x5f   :  { %540 = vmatmul.mubr.bf16.gmra.mrb[4].mxu1 %v711_v0 }
  0x61   :  { %532 = vmatmul.mubr.bf16.gmra.mrb[4].mxu0 %v711_v0 }
 0x12a   :  { %v810_v11 = vpop.f32.mrb[0].mxu1 }
 0x12b   :  { %375 = vst.msk [vmem:[#allocation10 + $0x50] sm:$0xff] %vm364_vm1, %v810_v11  ;;  %v814_v12 = vpop.f32.mrb[1].mxu1 }
 0x12c   :  { %v529_v13 = vpop.f32.mrb[0].mxu0  ;;  %373 = vst.msk [vmem:[#allocation10 + $0x40] sm:$0xff] %vm364_vm1, %v814_v12  ;;  %v818_v14 = vpop.f32.mrb[2].mxu1 }
 0x12d   :  { %367 = vst.msk [vmem:[#allocation10 + $0x10] sm:$0xff] %vm364_vm1, %v529_v13  ;;  %v301_v15 = vpop.f32.mrb[1].mxu0  ;;  %376 = vst.msk [vmem:[#allocation10 + $0x58] sm:$0xff] %vm364_vm1, %v818_v14  ;;  %v823_v16 = vpop.f32.mrb[3].mxu1  ;;  %v420_v20 = vmul.f32 %v529_v13, %v529_v13  ;;  %v384_v25 = vsel %vm364_vm1, %v529_v13, 0.0 }
 0x12e   :  { %365 = vst.msk [vmem:[#allocation10] sm:$0xff] %vm364_vm1, %v301_v15  ;;  %v418_v17 = vmul.f32 %v301_v15, %v301_v15  ;;  %v530_v18 = vpop.f32.mrb[2].mxu0  ;;  %374 = vst.msk [vmem:[#allocation10 + $0x48] sm:$0xff] %vm364_vm1, %v823_v16  ;;  %v381_v21 = vsel %vm364_vm1, %v301_v15, 0.0 }
 0x12f   :  { %368 = vst.msk [vmem:[#allocation10 + $0x18] sm:$0xff] %vm364_vm1, %v530_v18  ;;  %v304_v19 = vpop.f32.mrb[3].mxu0  ;;  %v421_v27 = vmul.f32 %v530_v18, %v530_v18  ;;  %v437_v33 = vsel %vm364_vm1, %v420_v20, 0.0  ;;  %v386_v34 = vsel %vm364_vm1, %v530_v18, 0.0 }
 0x130   :  { %366 = vst.msk [vmem:[#allocation10 + $0x8] sm:$0xff] %vm364_vm1, %v304_v19  ;;  %v382_v22 = vsel %vm364_vm1, %v304_v19, 0.0  ;;  %v419_v23 = vmul.f32 %v304_v19, %v304_v19  ;;  %v434_v26 = vsel %vm364_vm1, %v418_v17, 0.0 }
 0x131   :  { %v383_v24 = vadd.f32 %v382_v22, %v381_v21  ;;  %v439_v41 = vsel %vm364_vm1, %v421_v27, 0.0 }
 0x132   :  { %v435_v28 = vsel %vm364_vm1, %v419_v23, 0.0  ;;  %v835_v29 = vpop.f32.mrb[4].mxu1 }
 0x133   :  { %v385_v30 = vadd.f32 %v384_v25, %v383_v24  ;;  %v436_v31 = vadd.f32 %v435_v28, %v434_v26  ;;  %379 = vst.msk [vmem:[#allocation10 + $0x70] sm:$0xff] %vm364_vm1, %v835_v29  ;;  %v839_v32 = vpop.f32.mrb[5].mxu1 }
 0x134   :  { %v533_v35 = vpop.f32.mrb[4].mxu0  ;;  %377 = vst.msk [vmem:[#allocation10 + $0x60] sm:$0xff] %vm364_vm1, %v839_v32  ;;  %v845_v36 = vpop.f32.mrb[6].mxu1 }
 0x135   :  { %v438_v37 = vadd.f32 %v437_v33, %v436_v31  ;;  %371 = vst.msk [vmem:[#allocation10 + $0x30] sm:$0xff] %vm364_vm1, %v533_v35  ;;  %v317_v38 = vpop.f32.mrb[5].mxu0  ;;  %v387_v39 = vadd.f32 %v386_v34, %v385_v30  ;;  %380 = vst.msk [vmem:[#allocation10 + $0x78] sm:$0xff] %vm364_vm1, %v845_v36  ;;  %v850_v40 = vpop.f32.mrb[7].mxu1  ;;  %v424_v48 = vmul.f32 %v533_v35, %v533_v35 }
 0x136   :  { %369 = vst.msk [vmem:[#allocation10 + $0x20] sm:$0xff] %vm364_vm1, %v317_v38  ;;  %v388_v42 = vsel %vm364_vm1, %v317_v38, 0.0  ;;  %v422_v43 = vmul.f32 %v317_v38, %v317_v38  ;;  %v534_v44 = vpop.f32.mrb[6].mxu0  ;;  %378 = vst.msk [vmem:[#allocation10 + $0x68] sm:$0xff] %vm364_vm1, %v850_v40 }
 0x137   :  { %v389_v45 = vadd.f32 %v388_v42, %v387_v39  ;;  %v440_v46 = vadd.f32 %v439_v41, %v438_v37  ;;  %372 = vst.msk [vmem:[#allocation10 + $0x38] sm:$0xff] %vm364_vm1, %v534_v44  ;;  %v320_v47 = vpop.f32.mrb[7].mxu0 }
 0x138   :  { %v441_v49 = vsel %vm364_vm1, %v422_v43, 0.0  ;;  %370 = vst.msk [vmem:[#allocation10 + $0x28] sm:$0xff] %vm364_vm1, %v320_v47  ;;  %v390_v50 = vsel %vm364_vm1, %v320_v47, 0.0  ;;  %v423_v51 = vmul.f32 %v320_v47, %v320_v47 }
 0x139   :  { %v442_v52 = vadd.f32 %v441_v49, %v440_v46  ;;  %v391_v53 = vadd.f32 %v390_v50, %v389_v45 }
 0x13a   :  { %660 = shalt.err (!%p657_p8)
}
 0x13b   :  { %s661_s25 = scalar_lea.hbm %s937_s4, 2048 }
 0x13c   :  { %p662_p9 = scmp.ne.s32.totalorder %s937_s4, %s661_s25  ;;  %p665_p10 = scmp.lt.u32.totalorder %s661_s25, %s937_s4 }
 0x13e   :  { %p667_p11 = pnand %p665_p10, %p662_p9 }
 0x140   :  { %670 = shalt.err (!%p667_p11)
}
 0x141   :  { %486 = dma.vmem_to_hbm [thread:$0]  %s481_s20, 2048, %s937_s4, [#allocation4], %s705_s1, %s705_s1, %s706_s16   ;;  %v392_v54 = vsel %vm364_vm1, %v533_v35, 0.0  ;;  %v425_v55 = vmul.f32 %v534_v44, %v534_v44  ;;  %v443_v56 = vsel %vm364_vm1, %v423_v51, 0.0  ;;  %v426_v57 = vmul.f32 %v814_v12, %v814_v12 }
 0x142   :  { %v393_v58 = vadd.f32 %v392_v54, %v391_v53  ;;  %v444_v59 = vadd.f32 %v443_v56, %v442_v52  ;;  %v445_v60 = vsel %vm364_vm1, %v424_v48, 0.0  ;;  %v394_v61 = vsel %vm364_vm1, %v534_v44, 0.0  ;;  %s714_s4 = smov [#allocation11]  }
 0x143   :  { %v396_v62 = vsel %vm364_vm1, %v814_v12, 0.0  ;;  %v447_v1 = vsel %vm364_vm1, %v425_v55, 0.0  ;;  %v449_v2 = vsel %vm364_vm1, %v426_v57, 0.0  ;;  %v427_v3 = vmul.f32 %v823_v16, %v823_v16  ;;  %s493_s1 = sshll.u32 %s714_s4, 4  ;;  %s494_s1 = int_to_ptr.vmem [resolvable:$true] %s493_s1 }
 0x144   :  { %v446_v63 = vadd.f32 %v445_v60, %v444_v59  ;;  %v395_v0 = vadd.f32 %v394_v61, %v393_v58  ;;  %v428_v6 = vmul.f32 %v810_v11, %v810_v11  ;;  %v398_v7 = vsel %vm364_vm1, %v823_v16, 0.0  ;;  %s671_s16 = scalar_lea.vmem %s494_s1, 32  ;;  %p676_p13 = scmp.lt.s32.totalorder %s494_s1, %s494_s1 }
 0x145   :  { %v400_v10 = vsel %vm364_vm1, %v810_v11, 0.0  ;;  %v429_v12 = vmul.f32 %v818_v14, %v818_v14  ;;  %v451_v13 = vsel %vm364_vm1, %v427_v3, 0.0  ;;  %v430_v15 = vmul.f32 %v839_v32, %v839_v32  ;;  %p672_p12 = scmp.ne.s32.totalorder %s494_s1, %s671_s16  ;;  %p677_p0 = scmp.lt.s32.totalorder %s671_s16, %s671_s16 }
 0x146   :  { %v397_v4 = vadd.f32 %v396_v62, %v395_v0  ;;  %v448_v5 = vadd.f32 %v447_v1, %v446_v63  ;;  %v453_v19 = vsel %vm364_vm1, %v428_v6, 0.0  ;;  %v402_v16 = vsel %vm364_vm1, %v818_v14, 0.0 }
 0x147   :  { %v404_v20 = vsel %vm364_vm1, %v839_v32, 0.0  ;;  %v455_v22 = vsel %vm364_vm1, %v429_v12, 0.0  ;;  %v457_v23 = vsel %vm364_vm1, %v430_v15, 0.0  ;;  %v431_v24 = vmul.f32 %v850_v40, %v850_v40  ;;  %p678_p1 = por %p677_p0, %p676_p13 }
 0x148   :  { %v450_v8 = vadd.f32 %v449_v2, %v448_v5  ;;  %v399_v9 = vadd.f32 %v398_v7, %v397_v4  ;;  %v432_v27 = vmul.f32 %v835_v29, %v835_v29  ;;  %v406_v14 = vsel %vm364_vm1, %v850_v40, 0.0 }
 0x149   :  { %v408_v31 = vsel %vm364_vm1, %v835_v29, 0.0  ;;  %v433_v32 = vmul.f32 %v845_v36, %v845_v36  ;;  %v459_v33 = vsel %vm364_vm1, %v431_v24, 0.0  ;;  %v410_v38 = vsel %vm364_vm1, %v845_v36, 0.0  ;;  %p679_p2 = pnand %p678_p1, %p672_p12 }
 0x14a   :  { %v401_v17 = vadd.f32 %v400_v10, %v399_v9  ;;  %v452_v18 = vadd.f32 %v451_v13, %v450_v8  ;;  %v461_v37 = vsel %vm364_vm1, %v432_v27, 0.0  ;;  %vm471_vm2 = vcmask 1040384  }
 0x14b   :  { %v463_v40 = vsel %vm364_vm1, %v433_v32, 0.0  ;;  %vm473_vm3 = vcmask 517120  }
 0x14c   :  { %v454_v21 = vadd.f32 %v453_v19, %v452_v18  ;;  %v403_v11 = vadd.f32 %v402_v16, %v401_v17 }
 0x14e   :  { %v405_v25 = vadd.f32 %v404_v20, %v403_v11  ;;  %v456_v26 = vadd.f32 %v455_v22, %v454_v21 }
 0x150   :  { %v458_v28 = vadd.f32 %v457_v23, %v456_v26  ;;  %v407_v30 = vadd.f32 %v406_v14, %v405_v25 }
 0x152   :  { %v409_v34 = vadd.f32 %v408_v31, %v407_v30  ;;  %v460_v35 = vadd.f32 %v459_v33, %v458_v28 }
 0x154   :  { %v411_v39 = vadd.f32 %v410_v38, %v409_v34  ;;  %v462_v41 = vadd.f32 %v461_v37, %v460_v35 }
 0x156   :  { %v412_v42 = vrot.slane %v411_v39, 4  ;;  %v464_v43 = vadd.f32 %v463_v40, %v462_v41 }
 0x158   :  { %v413_v44 = vadd.f32 %v412_v42, %v411_v39  ;;  %v465_v29 = vrot.slane %v464_v43, 4 }
 0x15a   :  { %v414_v45 = vrot.slane %v413_v44, 2  ;;  %v466_v46 = vadd.f32 %v465_v29, %v464_v43 }
 0x15c   :  { %v415_v47 = vadd.f32 %v414_v45, %v413_v44  ;;  %v467_v48 = vrot.slane %v466_v46, 2 }
 0x15e   :  { %v416_v49 = vrot.slane %v415_v47, 1  ;;  %v468_v50 = vadd.f32 %v467_v48, %v466_v46 }
 0x160   :  { %v469_v51 = vrot.slane %v468_v50, 1  ;;  %v417_v52 = vadd.f32 %v416_v49, %v415_v47 }
 0x162   :  { %v470_v36 = vadd.f32 %v469_v51, %v468_v50 }
 0x164   :  { %v472_v53 = vsel %vm471_vm2, %v417_v52, %v470_v36 }
 0x165   :  { %474 = vst.msk [vmem:[#allocation11] sm:$0x3] %vm473_vm3, %v472_v53 }
 0x166   :  { %682 = shalt.err (!%p679_p2)
}
 0x167   :  { %s683_s7 = scalar_lea.hbm %s938_s5, 32 }
 0x168   :  { %p684_p3 = scmp.ne.s32.totalorder %s938_s5, %s683_s7  ;;  %p687_p4 = scmp.lt.u32.totalorder %s683_s7, %s938_s5 }
 0x16a   :  { %p689_p5 = pnand %p687_p4, %p684_p3 }
 0x16c   :  { %692 = shalt.err (!%p689_p5)
}
 0x16d   :  { %496 = dma.vmem_to_hbm [thread:$0]  %s494_s1, 32, %s938_s5, [#allocation12]  }
 0x16e   :  { %699 = dma.done.wait [#allocation4], 2048  }
 0x16f   :  { %700 = vsyncadd [#allocation4], 4294965248 }
 0x170   :  { %701 = dma.done.wait [#allocation12], 32  }
 0x171   :  { %702 = vsyncadd [#allocation12], 4294967264 }
 0x172   :  { %503 = vsyncpa [#allocation3], 1 }
 0x173   :  { %504 = vsyncpa [#allocation6], 1 }
 0x174   :  { %505 = vsyncpa [#allocation9], 1 }
 0x175   :  { %506 = vsyncpa [#allocation4], 1 }
 0x176   :  { %507 = vsyncpa [#allocation12], 1 }

</bundles_post_ra>
